<compile_context>
chip_gen: v5e
topology: v5e:2x2
jax: 0.10.0
libtpu: 0.0.40
codegen_flags: <defaults>
</compile_context>

<pallas_src>
import jax
import jax.numpy as jnp
from jax.experimental import pallas as pl
from jax.experimental.pallas import tpu as pltpu


def sleep_rnn3_kernel(x_ref,        # (T*B, F)   time-major, flattened
                      wih0_ref,     # (F, 3H)
                      bih0_ref,     # (1, 3H)
                      whhblk_ref,   # (2H, 6H)   block-diag [whh0T | whh1T]
                      bhh_ref,      # (1, 6H)    [bhh0 | bhh1]
                      wih1_ref,     # (H, 3H)
                      bih1_ref,     # (1, 3H)
                      wfc_ref,      # (H, 5)
                      bfc_ref,      # (1, 5)
                      out_ref):     # (B, 5)
    B = out_ref.shape[0]
    T = x_ref.shape[0] // B
    H = wih1_ref.shape[0]
    H3 = 3 * H
    f32 = jnp.float32

    # ---------------- hoisted, time-invariant work (off the serial chain) ---
    # Layer-0 input projection for ALL timesteps as a single matmul.
    gi0_all = (jnp.dot(x_ref[...], wih0_ref[...], preferred_element_type=f32)
               + bih0_ref[...])                                    # (T*B, 3H)

    # Pre-broadcast biases / load weights once (no per-step re-broadcast).
    bih1 = jnp.broadcast_to(bih1_ref[...], (B, H3))                # (B, 3H)
    bhh = jnp.broadcast_to(bhh_ref[...], (B, 2 * H3))              # (B, 6H)
    whhblk = whhblk_ref[...]
    wih1 = wih1_ref[...]

    def gates(gi, gh, h):
        # PyTorch GRU cell (gate order r, z, n):
        #   r = sigmoid(gi_r + gh_r);  z = sigmoid(gi_z + gh_z)
        #   n = tanh(gi_n + r * gh_n);  h' = (1 - z) * n + z * h
        r = jax.nn.sigmoid(gi[:, 0:H] + gh[:, 0:H])
        z = jax.nn.sigmoid(gi[:, H:2 * H] + gh[:, H:2 * H])
        n = jnp.tanh(gi[:, 2 * H:H3] + r * gh[:, 2 * H:H3])
        return (1.0 - z) * n + z * h

    h0 = jnp.zeros((B, H), f32)
    h1 = jnp.zeros((B, H), f32)

    # T is static and small: fully unroll so every slice/load is static and
    # the scheduler can overlap work across timesteps.
    for t in range(T):
        gi0 = gi0_all[t * B:(t + 1) * B, :]                        # static slice
        # Both recurrent projections depend only on the previous carries:
        # fuse them into one MXU push via the block-diagonal weight.
        hcat = jnp.concatenate([h0, h1], axis=1)                   # (B, 2H)
        gh_both = (jnp.dot(hcat, whhblk, preferred_element_type=f32)
                   + bhh)                                          # (B, 6H)
        gh0 = gh_both[:, 0:H3]
        gh1 = gh_both[:, H3:2 * H3]
        h0 = gates(gi0, gh0, h0)                                   # layer 0
        gi1 = jnp.dot(h0, wih1, preferred_element_type=f32) + bih1
        h1 = gates(gi1, gh1, h1)                                   # layer 1

    # FC on the last timestep's top-layer hidden state.
    out_ref[...] = (jnp.dot(h1, wfc_ref[...], preferred_element_type=f32)
                    + bfc_ref[...])


@jax.jit
def sleep_rnn3_forward(x, params):
    """x: (B, T, 6) batch_first, float32. Returns (B, 5)."""
    B, T, F = x.shape
    H = params["whh0T"].shape[0]
    H3 = 3 * H

    # Time-major + flattened so the hoisted layer-0 projection is one matmul.
    # (Negligible at these shapes; at production T*B this could be absorbed
    # into a BlockSpec/grid instead of a wrapper transpose.)
    x_flat = jnp.transpose(x, (1, 0, 2)).reshape(T * B, F)

    # One-time weight transforms: block-diagonal recurrent weight + fused bias.
    zeros = jnp.zeros((H, H3), jnp.float32)
    whh_blk = jnp.concatenate(
        [jnp.concatenate([params["whh0T"], zeros], axis=1),
         jnp.concatenate([zeros, params["whh1T"]], axis=1)], axis=0)  # (2H, 6H)
    bhh_cat = jnp.concatenate([params["bhh0"], params["bhh1"]], axis=1)  # (1, 6H)

    inputs = (x_flat,
              params["wih0T"], params["bih0"],
              whh_blk, bhh_cat,
              params["wih1T"], params["bih1"],
              params["wfcT"], params["bfc"])

    flops = (2 * T * B * F * H3                                  # hoisted input proj
             + T * (2 * B * (2 * H) * (2 * H3) + 2 * B * H * H3) # recurrence
             + 2 * B * H * 5)                                    # FC
    transcendentals = T * 2 * 3 * B * H
    bytes_accessed = 4 * (x_flat.size + whh_blk.size + bhh_cat.size
                          + params["wih0T"].size + params["bih0"].size
                          + params["wih1T"].size + params["bih1"].size
                          + params["wfcT"].size + params["bfc"].size
                          + B * 5)

    vmem = pl.BlockSpec(memory_space=pltpu.MemorySpace.VMEM)
    return pl.pallas_call(
        sleep_rnn3_kernel,
        out_shape=jax.ShapeDtypeStruct((B, 5), jnp.float32),
        in_specs=[vmem] * len(inputs),
        out_specs=vmem,
        cost_estimate=pl.CostEstimate(flops=flops,
                                      transcendentals=transcendentals,
                                      bytes_accessed=bytes_accessed),
    )(*inputs)


def init_params(key, input_size=6, hidden=16, out_features=5):
    """Deterministic uniform(-1/sqrt(H), 1/sqrt(H)) init (PyTorch-style shapes)."""
    ks = jax.random.split(key, 12)
    k = 1.0 / jnp.sqrt(jnp.float32(hidden))

    def u(kk, shape):
        return jax.random.uniform(kk, shape, jnp.float32, minval=-k, maxval=k)

    # PyTorch layout: weight_ih_l{n}: (3H, in), weight_hh_l{n}: (3H, H), biases (3H,)
    w_ih_l0 = u(ks[0], (3 * hidden, input_size))
    w_hh_l0 = u(ks[1], (3 * hidden, hidden))
    b_ih_l0 = u(ks[2], (3 * hidden,))
    b_hh_l0 = u(ks[3], (3 * hidden,))
    w_ih_l1 = u(ks[4], (3 * hidden, hidden))
    w_hh_l1 = u(ks[5], (3 * hidden, hidden))
    b_ih_l1 = u(ks[6], (3 * hidden,))
    b_hh_l1 = u(ks[7], (3 * hidden,))
    w_fc = u(ks[8], (out_features, hidden))
    b_fc = u(ks[9], (out_features,))

    return {
        "wih0T": w_ih_l0.T, "whh0T": w_hh_l0.T,
        "bih0": b_ih_l0.reshape(1, -1), "bhh0": b_hh_l0.reshape(1, -1),
        "wih1T": w_ih_l1.T, "whh1T": w_hh_l1.T,
        "bih1": b_ih_l1.reshape(1, -1), "bhh1": b_hh_l1.reshape(1, -1),
        "wfcT": w_fc.T, "bfc": b_fc.reshape(1, -1),
    }


def reference_forward(x, params, hidden=16):
    """Pure-JAX reference of the same math, for a correctness check."""
    B, T, _ = x.shape
    H = hidden

    def cell(x_t, h, wT, uT, bi, bh):
        gi = x_t @ wT + bi
        gh = h @ uT + bh
        r = jax.nn.sigmoid(gi[:, :H] + gh[:, :H])
        z = jax.nn.sigmoid(gi[:, H:2 * H] + gh[:, H:2 * H])
        n = jnp.tanh(gi[:, 2 * H:] + r * gh[:, 2 * H:])
        return (1.0 - z) * n + z * h

    h0 = jnp.zeros((B, H), jnp.float32)
    h1 = jnp.zeros((B, H), jnp.float32)
    for t in range(T):
        x_t = x[:, t, :]
        h0 = cell(x_t, h0, params["wih0T"], params["whh0T"],
                  params["bih0"], params["bhh0"])
        h1 = cell(h0, h1, params["wih1T"], params["whh1T"],
                  params["bih1"], params["bhh1"])
    return h1 @ params["wfcT"] + params["bfc"]


if __name__ == "__main__":
    key = jax.random.PRNGKey(0)
    k_x, k_p = jax.random.split(key)

    B, T, F, H = 2, 8, 6, 16
    x = jax.random.normal(k_x, (B, T, F), jnp.float32)
    params = init_params(k_p, input_size=F, hidden=H, out_features=5)

    out = sleep_rnn3_forward(x, params)
    out = jax.block_until_ready(out)

    ref = reference_forward(x, params, hidden=H)
    assert out.shape == (B, 5)
    assert jnp.allclose(out, ref, atol=1e-3, rtol=1e-3), (out, ref)

    print("KERNEL_OK")
</pallas_src>

<mosaic_0001>
module attributes {stable_mosaic.version = 11 : i64} {
  func.func @sleep_rnn3_kernel(%arg0: memref<16x6xf32, #tpu.memory_space<vmem>>, %arg1: memref<6x48xf32, #tpu.memory_space<vmem>>, %arg2: memref<1x48xf32, #tpu.memory_space<vmem>>, %arg3: memref<32x96xf32, #tpu.memory_space<vmem>>, %arg4: memref<1x96xf32, #tpu.memory_space<vmem>>, %arg5: memref<16x48xf32, #tpu.memory_space<vmem>>, %arg6: memref<1x48xf32, #tpu.memory_space<vmem>>, %arg7: memref<16x5xf32, #tpu.memory_space<vmem>>, %arg8: memref<1x5xf32, #tpu.memory_space<vmem>>, %arg9: memref<2x5xf32, #tpu.memory_space<vmem>>) attributes {dimension_semantics = [], scalar_prefetch = 0 : i64, scratch_operands = 0 : i64, tpu.core_type = #tpu.core_type<tc>} {
    %c0 = arith.constant 0 : index
    %c0_0 = arith.constant 0 : index
    %0 = vector.load %arg0[%c0, %c0_0] : memref<16x6xf32, #tpu.memory_space<vmem>>, vector<16x6xf32>
    %c0_1 = arith.constant 0 : index
    %c0_2 = arith.constant 0 : index
    %1 = vector.load %arg1[%c0_1, %c0_2] : memref<6x48xf32, #tpu.memory_space<vmem>>, vector<6x48xf32>
    %cst = arith.constant dense<0.000000e+00> : vector<16x48xf32>
    %2 = tpu.matmul %0, %1, %cst {dimension_numbers = #tpu.dot_dimension_numbers<[1], [0], [0], [1], [0, 0, 1, 1], [], []>} : vector<16x6xf32>, vector<6x48xf32>, vector<16x48xf32> -> vector<16x48xf32>
    %c0_3 = arith.constant 0 : index
    %c0_4 = arith.constant 0 : index
    %3 = vector.load %arg2[%c0_3, %c0_4] : memref<1x48xf32, #tpu.memory_space<vmem>>, vector<1x48xf32>
    %4 = vector.broadcast %3 : vector<1x48xf32> to vector<16x48xf32>
    %5 = arith.addf %2, %4 : vector<16x48xf32>
    %c0_5 = arith.constant 0 : index
    %c0_6 = arith.constant 0 : index
    %6 = vector.load %arg6[%c0_5, %c0_6] : memref<1x48xf32, #tpu.memory_space<vmem>>, vector<1x48xf32>
    %7 = vector.shape_cast %6 : vector<1x48xf32> to vector<1x48xf32>
    %8 = vector.broadcast %7 : vector<1x48xf32> to vector<2x48xf32>
    %c0_7 = arith.constant 0 : index
    %c0_8 = arith.constant 0 : index
    %9 = vector.load %arg4[%c0_7, %c0_8] : memref<1x96xf32, #tpu.memory_space<vmem>>, vector<1x96xf32>
    %10 = vector.shape_cast %9 : vector<1x96xf32> to vector<1x96xf32>
    %11 = vector.broadcast %10 : vector<1x96xf32> to vector<2x96xf32>
    %c0_9 = arith.constant 0 : index
    %c0_10 = arith.constant 0 : index
    %12 = vector.load %arg3[%c0_9, %c0_10] : memref<32x96xf32, #tpu.memory_space<vmem>>, vector<32x96xf32>
    %c0_11 = arith.constant 0 : index
    %c0_12 = arith.constant 0 : index
    %13 = vector.load %arg5[%c0_11, %c0_12] : memref<16x48xf32, #tpu.memory_space<vmem>>, vector<16x48xf32>
    %cst_13 = arith.constant 0.000000e+00 : f32
    %14 = vector.broadcast %cst_13 : f32 to vector<2x16xf32>
    %cst_14 = arith.constant 0.000000e+00 : f32
    %15 = vector.broadcast %cst_14 : f32 to vector<2x16xf32>
    %16 = vector.extract_strided_slice %5 {offsets = [0, 0], sizes = [2, 48], strides = [1, 1]} : vector<16x48xf32> to vector<2x48xf32>
    %17 = tpu.concatenate %14, %15 in 1 : vector<2x16xf32>, vector<2x16xf32> -> vector<2x32xf32>
    %cst_15 = arith.constant dense<0.000000e+00> : vector<2x96xf32>
    %18 = tpu.matmul %17, %12, %cst_15 {dimension_numbers = #tpu.dot_dimension_numbers<[1], [0], [0], [1], [0, 0, 1, 1], [], []>} : vector<2x32xf32>, vector<32x96xf32>, vector<2x96xf32> -> vector<2x96xf32>
    %19 = arith.addf %18, %11 : vector<2x96xf32>
    %20 = vector.extract_strided_slice %19 {offsets = [0, 0], sizes = [2, 48], strides = [1, 1]} : vector<2x96xf32> to vector<2x48xf32>
    %21 = vector.extract_strided_slice %19 {offsets = [0, 48], sizes = [2, 48], strides = [1, 1]} : vector<2x96xf32> to vector<2x48xf32>
    %22 = vector.extract_strided_slice %16 {offsets = [0, 0], sizes = [2, 16], strides = [1, 1]} : vector<2x48xf32> to vector<2x16xf32>
    %23 = vector.extract_strided_slice %20 {offsets = [0, 0], sizes = [2, 16], strides = [1, 1]} : vector<2x48xf32> to vector<2x16xf32>
    %24 = arith.addf %22, %23 : vector<2x16xf32>
    %25 = arith.negf %24 : vector<2x16xf32>
    %26 = math.exp %25 : vector<2x16xf32>
    %cst_16 = arith.constant 1.000000e+00 : f32
    %27 = vector.broadcast %cst_16 : f32 to vector<2x16xf32>
    %28 = arith.addf %27, %26 : vector<2x16xf32>
    %29 = arith.divf %27, %28 : vector<2x16xf32>
    %30 = vector.extract_strided_slice %16 {offsets = [0, 16], sizes = [2, 16], strides = [1, 1]} : vector<2x48xf32> to vector<2x16xf32>
    %31 = vector.extract_strided_slice %20 {offsets = [0, 16], sizes = [2, 16], strides = [1, 1]} : vector<2x48xf32> to vector<2x16xf32>
    %32 = arith.addf %30, %31 : vector<2x16xf32>
    %33 = arith.negf %32 : vector<2x16xf32>
    %34 = math.exp %33 : vector<2x16xf32>
    %cst_17 = arith.constant 1.000000e+00 : f32
    %35 = vector.broadcast %cst_17 : f32 to vector<2x16xf32>
    %36 = arith.addf %35, %34 : vector<2x16xf32>
    %37 = arith.divf %35, %36 : vector<2x16xf32>
    %38 = vector.extract_strided_slice %16 {offsets = [0, 32], sizes = [2, 16], strides = [1, 1]} : vector<2x48xf32> to vector<2x16xf32>
    %39 = vector.extract_strided_slice %20 {offsets = [0, 32], sizes = [2, 16], strides = [1, 1]} : vector<2x48xf32> to vector<2x16xf32>
    %40 = arith.mulf %29, %39 : vector<2x16xf32>
    %41 = arith.addf %38, %40 : vector<2x16xf32>
    %42 = math.tanh %41 : vector<2x16xf32>
    %cst_18 = arith.constant 1.000000e+00 : f32
    %43 = vector.broadcast %cst_18 : f32 to vector<2x16xf32>
    %44 = arith.subf %43, %37 : vector<2x16xf32>
    %45 = arith.mulf %44, %42 : vector<2x16xf32>
    %46 = arith.mulf %37, %14 : vector<2x16xf32>
    %47 = arith.addf %45, %46 : vector<2x16xf32>
    %cst_19 = arith.constant dense<0.000000e+00> : vector<2x48xf32>
    %48 = tpu.matmul %47, %13, %cst_19 {dimension_numbers = #tpu.dot_dimension_numbers<[1], [0], [0], [1], [0, 0, 1, 1], [], []>} : vector<2x16xf32>, vector<16x48xf32>, vector<2x48xf32> -> vector<2x48xf32>
    %49 = arith.addf %48, %8 : vector<2x48xf32>
    %50 = vector.extract_strided_slice %49 {offsets = [0, 0], sizes = [2, 16], strides = [1, 1]} : vector<2x48xf32> to vector<2x16xf32>
    %51 = vector.extract_strided_slice %21 {offsets = [0, 0], sizes = [2, 16], strides = [1, 1]} : vector<2x48xf32> to vector<2x16xf32>
    %52 = arith.addf %50, %51 : vector<2x16xf32>
    %53 = arith.negf %52 : vector<2x16xf32>
    %54 = math.exp %53 : vector<2x16xf32>
    %cst_20 = arith.constant 1.000000e+00 : f32
    %55 = vector.broadcast %cst_20 : f32 to vector<2x16xf32>
    %56 = arith.addf %55, %54 : vector<2x16xf32>
    %57 = arith.divf %55, %56 : vector<2x16xf32>
    %58 = vector.extract_strided_slice %49 {offsets = [0, 16], sizes = [2, 16], strides = [1, 1]} : vector<2x48xf32> to vector<2x16xf32>
    %59 = vector.extract_strided_slice %21 {offsets = [0, 16], sizes = [2, 16], strides = [1, 1]} : vector<2x48xf32> to vector<2x16xf32>
    %60 = arith.addf %58, %59 : vector<2x16xf32>
    %61 = arith.negf %60 : vector<2x16xf32>
    %62 = math.exp %61 : vector<2x16xf32>
    %cst_21 = arith.constant 1.000000e+00 : f32
    %63 = vector.broadcast %cst_21 : f32 to vector<2x16xf32>
    %64 = arith.addf %63, %62 : vector<2x16xf32>
    %65 = arith.divf %63, %64 : vector<2x16xf32>
    %66 = vector.extract_strided_slice %49 {offsets = [0, 32], sizes = [2, 16], strides = [1, 1]} : vector<2x48xf32> to vector<2x16xf32>
    %67 = vector.extract_strided_slice %21 {offsets = [0, 32], sizes = [2, 16], strides = [1, 1]} : vector<2x48xf32> to vector<2x16xf32>
    %68 = arith.mulf %57, %67 : vector<2x16xf32>
    %69 = arith.addf %66, %68 : vector<2x16xf32>
    %70 = math.tanh %69 : vector<2x16xf32>
    %cst_22 = arith.constant 1.000000e+00 : f32
    %71 = vector.broadcast %cst_22 : f32 to vector<2x16xf32>
    %72 = arith.subf %71, %65 : vector<2x16xf32>
    %73 = arith.mulf %72, %70 : vector<2x16xf32>
    %74 = arith.mulf %65, %15 : vector<2x16xf32>
    %75 = arith.addf %73, %74 : vector<2x16xf32>
    %76 = vector.extract_strided_slice %5 {offsets = [2, 0], sizes = [2, 48], strides = [1, 1]} : vector<16x48xf32> to vector<2x48xf32>
    %77 = tpu.concatenate %47, %75 in 1 : vector<2x16xf32>, vector<2x16xf32> -> vector<2x32xf32>
    %cst_23 = arith.constant dense<0.000000e+00> : vector<2x96xf32>
    %78 = tpu.matmul %77, %12, %cst_23 {dimension_numbers = #tpu.dot_dimension_numbers<[1], [0], [0], [1], [0, 0, 1, 1], [], []>} : vector<2x32xf32>, vector<32x96xf32>, vector<2x96xf32> -> vector<2x96xf32>
    %79 = arith.addf %78, %11 : vector<2x96xf32>
    %80 = vector.extract_strided_slice %79 {offsets = [0, 0], sizes = [2, 48], strides = [1, 1]} : vector<2x96xf32> to vector<2x48xf32>
    %81 = vector.extract_strided_slice %79 {offsets = [0, 48], sizes = [2, 48], strides = [1, 1]} : vector<2x96xf32> to vector<2x48xf32>
    %82 = vector.extract_strided_slice %76 {offsets = [0, 0], sizes = [2, 16], strides = [1, 1]} : vector<2x48xf32> to vector<2x16xf32>
    %83 = vector.extract_strided_slice %80 {offsets = [0, 0], sizes = [2, 16], strides = [1, 1]} : vector<2x48xf32> to vector<2x16xf32>
    %84 = arith.addf %82, %83 : vector<2x16xf32>
    %85 = arith.negf %84 : vector<2x16xf32>
    %86 = math.exp %85 : vector<2x16xf32>
    %cst_24 = arith.constant 1.000000e+00 : f32
    %87 = vector.broadcast %cst_24 : f32 to vector<2x16xf32>
    %88 = arith.addf %87, %86 : vector<2x16xf32>
    %89 = arith.divf %87, %88 : vector<2x16xf32>
    %90 = vector.extract_strided_slice %76 {offsets = [0, 16], sizes = [2, 16], strides = [1, 1]} : vector<2x48xf32> to vector<2x16xf32>
    %91 = vector.extract_strided_slice %80 {offsets = [0, 16], sizes = [2, 16], strides = [1, 1]} : vector<2x48xf32> to vector<2x16xf32>
    %92 = arith.addf %90, %91 : vector<2x16xf32>
    %93 = arith.negf %92 : vector<2x16xf32>
    %94 = math.exp %93 : vector<2x16xf32>
    %cst_25 = arith.constant 1.000000e+00 : f32
    %95 = vector.broadcast %cst_25 : f32 to vector<2x16xf32>
    %96 = arith.addf %95, %94 : vector<2x16xf32>
    %97 = arith.divf %95, %96 : vector<2x16xf32>
    %98 = vector.extract_strided_slice %76 {offsets = [0, 32], sizes = [2, 16], strides = [1, 1]} : vector<2x48xf32> to vector<2x16xf32>
    %99 = vector.extract_strided_slice %80 {offsets = [0, 32], sizes = [2, 16], strides = [1, 1]} : vector<2x48xf32> to vector<2x16xf32>
    %100 = arith.mulf %89, %99 : vector<2x16xf32>
    %101 = arith.addf %98, %100 : vector<2x16xf32>
    %102 = math.tanh %101 : vector<2x16xf32>
    %cst_26 = arith.constant 1.000000e+00 : f32
    %103 = vector.broadcast %cst_26 : f32 to vector<2x16xf32>
    %104 = arith.subf %103, %97 : vector<2x16xf32>
    %105 = arith.mulf %104, %102 : vector<2x16xf32>
    %106 = arith.mulf %97, %47 : vector<2x16xf32>
    %107 = arith.addf %105, %106 : vector<2x16xf32>
    %cst_27 = arith.constant dense<0.000000e+00> : vector<2x48xf32>
    %108 = tpu.matmul %107, %13, %cst_27 {dimension_numbers = #tpu.dot_dimension_numbers<[1], [0], [0], [1], [0, 0, 1, 1], [], []>} : vector<2x16xf32>, vector<16x48xf32>, vector<2x48xf32> -> vector<2x48xf32>
    %109 = arith.addf %108, %8 : vector<2x48xf32>
    %110 = vector.extract_strided_slice %109 {offsets = [0, 0], sizes = [2, 16], strides = [1, 1]} : vector<2x48xf32> to vector<2x16xf32>
    %111 = vector.extract_strided_slice %81 {offsets = [0, 0], sizes = [2, 16], strides = [1, 1]} : vector<2x48xf32> to vector<2x16xf32>
    %112 = arith.addf %110, %111 : vector<2x16xf32>
    %113 = arith.negf %112 : vector<2x16xf32>
    %114 = math.exp %113 : vector<2x16xf32>
    %cst_28 = arith.constant 1.000000e+00 : f32
    %115 = vector.broadcast %cst_28 : f32 to vector<2x16xf32>
    %116 = arith.addf %115, %114 : vector<2x16xf32>
    %117 = arith.divf %115, %116 : vector<2x16xf32>
    %118 = vector.extract_strided_slice %109 {offsets = [0, 16], sizes = [2, 16], strides = [1, 1]} : vector<2x48xf32> to vector<2x16xf32>
    %119 = vector.extract_strided_slice %81 {offsets = [0, 16], sizes = [2, 16], strides = [1, 1]} : vector<2x48xf32> to vector<2x16xf32>
    %120 = arith.addf %118, %119 : vector<2x16xf32>
    %121 = arith.negf %120 : vector<2x16xf32>
    %122 = math.exp %121 : vector<2x16xf32>
    %cst_29 = arith.constant 1.000000e+00 : f32
    %123 = vector.broadcast %cst_29 : f32 to vector<2x16xf32>
    %124 = arith.addf %123, %122 : vector<2x16xf32>
    %125 = arith.divf %123, %124 : vector<2x16xf32>
    %126 = vector.extract_strided_slice %109 {offsets = [0, 32], sizes = [2, 16], strides = [1, 1]} : vector<2x48xf32> to vector<2x16xf32>
    %127 = vector.extract_strided_slice %81 {offsets = [0, 32], sizes = [2, 16], strides = [1, 1]} : vector<2x48xf32> to vector<2x16xf32>
    %128 = arith.mulf %117, %127 : vector<2x16xf32>
    %129 = arith.addf %126, %128 : vector<2x16xf32>
    %130 = math.tanh %129 : vector<2x16xf32>
    %cst_30 = arith.constant 1.000000e+00 : f32
    %131 = vector.broadcast %cst_30 : f32 to vector<2x16xf32>
    %132 = arith.subf %131, %125 : vector<2x16xf32>
    %133 = arith.mulf %132, %130 : vector<2x16xf32>
    %134 = arith.mulf %125, %75 : vector<2x16xf32>
    %135 = arith.addf %133, %134 : vector<2x16xf32>
    %136 = vector.extract_strided_slice %5 {offsets = [4, 0], sizes = [2, 48], strides = [1, 1]} : vector<16x48xf32> to vector<2x48xf32>
    %137 = tpu.concatenate %107, %135 in 1 : vector<2x16xf32>, vector<2x16xf32> -> vector<2x32xf32>
    %cst_31 = arith.constant dense<0.000000e+00> : vector<2x96xf32>
    %138 = tpu.matmul %137, %12, %cst_31 {dimension_numbers = #tpu.dot_dimension_numbers<[1], [0], [0], [1], [0, 0, 1, 1], [], []>} : vector<2x32xf32>, vector<32x96xf32>, vector<2x96xf32> -> vector<2x96xf32>
    %139 = arith.addf %138, %11 : vector<2x96xf32>
    %140 = vector.extract_strided_slice %139 {offsets = [0, 0], sizes = [2, 48], strides = [1, 1]} : vector<2x96xf32> to vector<2x48xf32>
    %141 = vector.extract_strided_slice %139 {offsets = [0, 48], sizes = [2, 48], strides = [1, 1]} : vector<2x96xf32> to vector<2x48xf32>
    %142 = vector.extract_strided_slice %136 {offsets = [0, 0], sizes = [2, 16], strides = [1, 1]} : vector<2x48xf32> to vector<2x16xf32>
    %143 = vector.extract_strided_slice %140 {offsets = [0, 0], sizes = [2, 16], strides = [1, 1]} : vector<2x48xf32> to vector<2x16xf32>
    %144 = arith.addf %142, %143 : vector<2x16xf32>
    %145 = arith.negf %144 : vector<2x16xf32>
    %146 = math.exp %145 : vector<2x16xf32>
    %cst_32 = arith.constant 1.000000e+00 : f32
    %147 = vector.broadcast %cst_32 : f32 to vector<2x16xf32>
    %148 = arith.addf %147, %146 : vector<2x16xf32>
    %149 = arith.divf %147, %148 : vector<2x16xf32>
    %150 = vector.extract_strided_slice %136 {offsets = [0, 16], sizes = [2, 16], strides = [1, 1]} : vector<2x48xf32> to vector<2x16xf32>
    %151 = vector.extract_strided_slice %140 {offsets = [0, 16], sizes = [2, 16], strides = [1, 1]} : vector<2x48xf32> to vector<2x16xf32>
    %152 = arith.addf %150, %151 : vector<2x16xf32>
    %153 = arith.negf %152 : vector<2x16xf32>
    %154 = math.exp %153 : vector<2x16xf32>
    %cst_33 = arith.constant 1.000000e+00 : f32
    %155 = vector.broadcast %cst_33 : f32 to vector<2x16xf32>
    %156 = arith.addf %155, %154 : vector<2x16xf32>
    %157 = arith.divf %155, %156 : vector<2x16xf32>
    %158 = vector.extract_strided_slice %136 {offsets = [0, 32], sizes = [2, 16], strides = [1, 1]} : vector<2x48xf32> to vector<2x16xf32>
    %159 = vector.extract_strided_slice %140 {offsets = [0, 32], sizes = [2, 16], strides = [1, 1]} : vector<2x48xf32> to vector<2x16xf32>
    %160 = arith.mulf %149, %159 : vector<2x16xf32>
    %161 = arith.addf %158, %160 : vector<2x16xf32>
    %162 = math.tanh %161 : vector<2x16xf32>
    %cst_34 = arith.constant 1.000000e+00 : f32
    %163 = vector.broadcast %cst_34 : f32 to vector<2x16xf32>
    %164 = arith.subf %163, %157 : vector<2x16xf32>
    %165 = arith.mulf %164, %162 : vector<2x16xf32>
    %166 = arith.mulf %157, %107 : vector<2x16xf32>
    %167 = arith.addf %165, %166 : vector<2x16xf32>
    %cst_35 = arith.constant dense<0.000000e+00> : vector<2x48xf32>
    %168 = tpu.matmul %167, %13, %cst_35 {dimension_numbers = #tpu.dot_dimension_numbers<[1], [0], [0], [1], [0, 0, 1, 1], [], []>} : vector<2x16xf32>, vector<16x48xf32>, vector<2x48xf32> -> vector<2x48xf32>
    %169 = arith.addf %168, %8 : vector<2x48xf32>
    %170 = vector.extract_strided_slice %169 {offsets = [0, 0], sizes = [2, 16], strides = [1, 1]} : vector<2x48xf32> to vector<2x16xf32>
    %171 = vector.extract_strided_slice %141 {offsets = [0, 0], sizes = [2, 16], strides = [1, 1]} : vector<2x48xf32> to vector<2x16xf32>
    %172 = arith.addf %170, %171 : vector<2x16xf32>
    %173 = arith.negf %172 : vector<2x16xf32>
    %174 = math.exp %173 : vector<2x16xf32>
    %cst_36 = arith.constant 1.000000e+00 : f32
    %175 = vector.broadcast %cst_36 : f32 to vector<2x16xf32>
    %176 = arith.addf %175, %174 : vector<2x16xf32>
    %177 = arith.divf %175, %176 : vector<2x16xf32>
    %178 = vector.extract_strided_slice %169 {offsets = [0, 16], sizes = [2, 16], strides = [1, 1]} : vector<2x48xf32> to vector<2x16xf32>
    %179 = vector.extract_strided_slice %141 {offsets = [0, 16], sizes = [2, 16], strides = [1, 1]} : vector<2x48xf32> to vector<2x16xf32>
    %180 = arith.addf %178, %179 : vector<2x16xf32>
    %181 = arith.negf %180 : vector<2x16xf32>
    %182 = math.exp %181 : vector<2x16xf32>
    %cst_37 = arith.constant 1.000000e+00 : f32
    %183 = vector.broadcast %cst_37 : f32 to vector<2x16xf32>
    %184 = arith.addf %183, %182 : vector<2x16xf32>
    %185 = arith.divf %183, %184 : vector<2x16xf32>
    %186 = vector.extract_strided_slice %169 {offsets = [0, 32], sizes = [2, 16], strides = [1, 1]} : vector<2x48xf32> to vector<2x16xf32>
    %187 = vector.extract_strided_slice %141 {offsets = [0, 32], sizes = [2, 16], strides = [1, 1]} : vector<2x48xf32> to vector<2x16xf32>
    %188 = arith.mulf %177, %187 : vector<2x16xf32>
    %189 = arith.addf %186, %188 : vector<2x16xf32>
    %190 = math.tanh %189 : vector<2x16xf32>
    %cst_38 = arith.constant 1.000000e+00 : f32
    %191 = vector.broadcast %cst_38 : f32 to vector<2x16xf32>
    %192 = arith.subf %191, %185 : vector<2x16xf32>
    %193 = arith.mulf %192, %190 : vector<2x16xf32>
    %194 = arith.mulf %185, %135 : vector<2x16xf32>
    %195 = arith.addf %193, %194 : vector<2x16xf32>
    %196 = vector.extract_strided_slice %5 {offsets = [6, 0], sizes = [2, 48], strides = [1, 1]} : vector<16x48xf32> to vector<2x48xf32>
    %197 = tpu.concatenate %167, %195 in 1 : vector<2x16xf32>, vector<2x16xf32> -> vector<2x32xf32>
    %cst_39 = arith.constant dense<0.000000e+00> : vector<2x96xf32>
    %198 = tpu.matmul %197, %12, %cst_39 {dimension_numbers = #tpu.dot_dimension_numbers<[1], [0], [0], [1], [0, 0, 1, 1], [], []>} : vector<2x32xf32>, vector<32x96xf32>, vector<2x96xf32> -> vector<2x96xf32>
    %199 = arith.addf %198, %11 : vector<2x96xf32>
    %200 = vector.extract_strided_slice %199 {offsets = [0, 0], sizes = [2, 48], strides = [1, 1]} : vector<2x96xf32> to vector<2x48xf32>
    %201 = vector.extract_strided_slice %199 {offsets = [0, 48], sizes = [2, 48], strides = [1, 1]} : vector<2x96xf32> to vector<2x48xf32>
    %202 = vector.extract_strided_slice %196 {offsets = [0, 0], sizes = [2, 16], strides = [1, 1]} : vector<2x48xf32> to vector<2x16xf32>
    %203 = vector.extract_strided_slice %200 {offsets = [0, 0], sizes = [2, 16], strides = [1, 1]} : vector<2x48xf32> to vector<2x16xf32>
    %204 = arith.addf %202, %203 : vector<2x16xf32>
    %205 = arith.negf %204 : vector<2x16xf32>
    %206 = math.exp %205 : vector<2x16xf32>
    %cst_40 = arith.constant 1.000000e+00 : f32
    %207 = vector.broadcast %cst_40 : f32 to vector<2x16xf32>
    %208 = arith.addf %207, %206 : vector<2x16xf32>
    %209 = arith.divf %207, %208 : vector<2x16xf32>
    %210 = vector.extract_strided_slice %196 {offsets = [0, 16], sizes = [2, 16], strides = [1, 1]} : vector<2x48xf32> to vector<2x16xf32>
    %211 = vector.extract_strided_slice %200 {offsets = [0, 16], sizes = [2, 16], strides = [1, 1]} : vector<2x48xf32> to vector<2x16xf32>
    %212 = arith.addf %210, %211 : vector<2x16xf32>
    %213 = arith.negf %212 : vector<2x16xf32>
    %214 = math.exp %213 : vector<2x16xf32>
    %cst_41 = arith.constant 1.000000e+00 : f32
    %215 = vector.broadcast %cst_41 : f32 to vector<2x16xf32>
    %216 = arith.addf %215, %214 : vector<2x16xf32>
    %217 = arith.divf %215, %216 : vector<2x16xf32>
    %218 = vector.extract_strided_slice %196 {offsets = [0, 32], sizes = [2, 16], strides = [1, 1]} : vector<2x48xf32> to vector<2x16xf32>
    %219 = vector.extract_strided_slice %200 {offsets = [0, 32], sizes = [2, 16], strides = [1, 1]} : vector<2x48xf32> to vector<2x16xf32>
    %220 = arith.mulf %209, %219 : vector<2x16xf32>
    %221 = arith.addf %218, %220 : vector<2x16xf32>
    %222 = math.tanh %221 : vector<2x16xf32>
    %cst_42 = arith.constant 1.000000e+00 : f32
    %223 = vector.broadcast %cst_42 : f32 to vector<2x16xf32>
    %224 = arith.subf %223, %217 : vector<2x16xf32>
    %225 = arith.mulf %224, %222 : vector<2x16xf32>
    %226 = arith.mulf %217, %167 : vector<2x16xf32>
    %227 = arith.addf %225, %226 : vector<2x16xf32>
    %cst_43 = arith.constant dense<0.000000e+00> : vector<2x48xf32>
    %228 = tpu.matmul %227, %13, %cst_43 {dimension_numbers = #tpu.dot_dimension_numbers<[1], [0], [0], [1], [0, 0, 1, 1], [], []>} : vector<2x16xf32>, vector<16x48xf32>, vector<2x48xf32> -> vector<2x48xf32>
    %229 = arith.addf %228, %8 : vector<2x48xf32>
    %230 = vector.extract_strided_slice %229 {offsets = [0, 0], sizes = [2, 16], strides = [1, 1]} : vector<2x48xf32> to vector<2x16xf32>
    %231 = vector.extract_strided_slice %201 {offsets = [0, 0], sizes = [2, 16], strides = [1, 1]} : vector<2x48xf32> to vector<2x16xf32>
    %232 = arith.addf %230, %231 : vector<2x16xf32>
    %233 = arith.negf %232 : vector<2x16xf32>
    %234 = math.exp %233 : vector<2x16xf32>
    %cst_44 = arith.constant 1.000000e+00 : f32
    %235 = vector.broadcast %cst_44 : f32 to vector<2x16xf32>
    %236 = arith.addf %235, %234 : vector<2x16xf32>
    %237 = arith.divf %235, %236 : vector<2x16xf32>
    %238 = vector.extract_strided_slice %229 {offsets = [0, 16], sizes = [2, 16], strides = [1, 1]} : vector<2x48xf32> to vector<2x16xf32>
    %239 = vector.extract_strided_slice %201 {offsets = [0, 16], sizes = [2, 16], strides = [1, 1]} : vector<2x48xf32> to vector<2x16xf32>
    %240 = arith.addf %238, %239 : vector<2x16xf32>
    %241 = arith.negf %240 : vector<2x16xf32>
    %242 = math.exp %241 : vector<2x16xf32>
    %cst_45 = arith.constant 1.000000e+00 : f32
    %243 = vector.broadcast %cst_45 : f32 to vector<2x16xf32>
    %244 = arith.addf %243, %242 : vector<2x16xf32>
    %245 = arith.divf %243, %244 : vector<2x16xf32>
    %246 = vector.extract_strided_slice %229 {offsets = [0, 32], sizes = [2, 16], strides = [1, 1]} : vector<2x48xf32> to vector<2x16xf32>
    %247 = vector.extract_strided_slice %201 {offsets = [0, 32], sizes = [2, 16], strides = [1, 1]} : vector<2x48xf32> to vector<2x16xf32>
    %248 = arith.mulf %237, %247 : vector<2x16xf32>
    %249 = arith.addf %246, %248 : vector<2x16xf32>
    %250 = math.tanh %249 : vector<2x16xf32>
    %cst_46 = arith.constant 1.000000e+00 : f32
    %251 = vector.broadcast %cst_46 : f32 to vector<2x16xf32>
    %252 = arith.subf %251, %245 : vector<2x16xf32>
    %253 = arith.mulf %252, %250 : vector<2x16xf32>
    %254 = arith.mulf %245, %195 : vector<2x16xf32>
    %255 = arith.addf %253, %254 : vector<2x16xf32>
    %256 = vector.extract_strided_slice %5 {offsets = [8, 0], sizes = [2, 48], strides = [1, 1]} : vector<16x48xf32> to vector<2x48xf32>
    %257 = tpu.concatenate %227, %255 in 1 : vector<2x16xf32>, vector<2x16xf32> -> vector<2x32xf32>
    %cst_47 = arith.constant dense<0.000000e+00> : vector<2x96xf32>
    %258 = tpu.matmul %257, %12, %cst_47 {dimension_numbers = #tpu.dot_dimension_numbers<[1], [0], [0], [1], [0, 0, 1, 1], [], []>} : vector<2x32xf32>, vector<32x96xf32>, vector<2x96xf32> -> vector<2x96xf32>
    %259 = arith.addf %258, %11 : vector<2x96xf32>
    %260 = vector.extract_strided_slice %259 {offsets = [0, 0], sizes = [2, 48], strides = [1, 1]} : vector<2x96xf32> to vector<2x48xf32>
    %261 = vector.extract_strided_slice %259 {offsets = [0, 48], sizes = [2, 48], strides = [1, 1]} : vector<2x96xf32> to vector<2x48xf32>
    %262 = vector.extract_strided_slice %256 {offsets = [0, 0], sizes = [2, 16], strides = [1, 1]} : vector<2x48xf32> to vector<2x16xf32>
    %263 = vector.extract_strided_slice %260 {offsets = [0, 0], sizes = [2, 16], strides = [1, 1]} : vector<2x48xf32> to vector<2x16xf32>
    %264 = arith.addf %262, %263 : vector<2x16xf32>
    %265 = arith.negf %264 : vector<2x16xf32>
    %266 = math.exp %265 : vector<2x16xf32>
    %cst_48 = arith.constant 1.000000e+00 : f32
    %267 = vector.broadcast %cst_48 : f32 to vector<2x16xf32>
    %268 = arith.addf %267, %266 : vector<2x16xf32>
    %269 = arith.divf %267, %268 : vector<2x16xf32>
    %270 = vector.extract_strided_slice %256 {offsets = [0, 16], sizes = [2, 16], strides = [1, 1]} : vector<2x48xf32> to vector<2x16xf32>
    %271 = vector.extract_strided_slice %260 {offsets = [0, 16], sizes = [2, 16], strides = [1, 1]} : vector<2x48xf32> to vector<2x16xf32>
    %272 = arith.addf %270, %271 : vector<2x16xf32>
    %273 = arith.negf %272 : vector<2x16xf32>
    %274 = math.exp %273 : vector<2x16xf32>
    %cst_49 = arith.constant 1.000000e+00 : f32
    %275 = vector.broadcast %cst_49 : f32 to vector<2x16xf32>
    %276 = arith.addf %275, %274 : vector<2x16xf32>
    %277 = arith.divf %275, %276 : vector<2x16xf32>
    %278 = vector.extract_strided_slice %256 {offsets = [0, 32], sizes = [2, 16], strides = [1, 1]} : vector<2x48xf32> to vector<2x16xf32>
    %279 = vector.extract_strided_slice %260 {offsets = [0, 32], sizes = [2, 16], strides = [1, 1]} : vector<2x48xf32> to vector<2x16xf32>
    %280 = arith.mulf %269, %279 : vector<2x16xf32>
    %281 = arith.addf %278, %280 : vector<2x16xf32>
    %282 = math.tanh %281 : vector<2x16xf32>
    %cst_50 = arith.constant 1.000000e+00 : f32
    %283 = vector.broadcast %cst_50 : f32 to vector<2x16xf32>
    %284 = arith.subf %283, %277 : vector<2x16xf32>
    %285 = arith.mulf %284, %282 : vector<2x16xf32>
    %286 = arith.mulf %277, %227 : vector<2x16xf32>
    %287 = arith.addf %285, %286 : vector<2x16xf32>
    %cst_51 = arith.constant dense<0.000000e+00> : vector<2x48xf32>
    %288 = tpu.matmul %287, %13, %cst_51 {dimension_numbers = #tpu.dot_dimension_numbers<[1], [0], [0], [1], [0, 0, 1, 1], [], []>} : vector<2x16xf32>, vector<16x48xf32>, vector<2x48xf32> -> vector<2x48xf32>
    %289 = arith.addf %288, %8 : vector<2x48xf32>
    %290 = vector.extract_strided_slice %289 {offsets = [0, 0], sizes = [2, 16], strides = [1, 1]} : vector<2x48xf32> to vector<2x16xf32>
    %291 = vector.extract_strided_slice %261 {offsets = [0, 0], sizes = [2, 16], strides = [1, 1]} : vector<2x48xf32> to vector<2x16xf32>
    %292 = arith.addf %290, %291 : vector<2x16xf32>
    %293 = arith.negf %292 : vector<2x16xf32>
    %294 = math.exp %293 : vector<2x16xf32>
    %cst_52 = arith.constant 1.000000e+00 : f32
    %295 = vector.broadcast %cst_52 : f32 to vector<2x16xf32>
    %296 = arith.addf %295, %294 : vector<2x16xf32>
    %297 = arith.divf %295, %296 : vector<2x16xf32>
    %298 = vector.extract_strided_slice %289 {offsets = [0, 16], sizes = [2, 16], strides = [1, 1]} : vector<2x48xf32> to vector<2x16xf32>
    %299 = vector.extract_strided_slice %261 {offsets = [0, 16], sizes = [2, 16], strides = [1, 1]} : vector<2x48xf32> to vector<2x16xf32>
    %300 = arith.addf %298, %299 : vector<2x16xf32>
    %301 = arith.negf %300 : vector<2x16xf32>
    %302 = math.exp %301 : vector<2x16xf32>
    %cst_53 = arith.constant 1.000000e+00 : f32
    %303 = vector.broadcast %cst_53 : f32 to vector<2x16xf32>
    %304 = arith.addf %303, %302 : vector<2x16xf32>
    %305 = arith.divf %303, %304 : vector<2x16xf32>
    %306 = vector.extract_strided_slice %289 {offsets = [0, 32], sizes = [2, 16], strides = [1, 1]} : vector<2x48xf32> to vector<2x16xf32>
    %307 = vector.extract_strided_slice %261 {offsets = [0, 32], sizes = [2, 16], strides = [1, 1]} : vector<2x48xf32> to vector<2x16xf32>
    %308 = arith.mulf %297, %307 : vector<2x16xf32>
    %309 = arith.addf %306, %308 : vector<2x16xf32>
    %310 = math.tanh %309 : vector<2x16xf32>
    %cst_54 = arith.constant 1.000000e+00 : f32
    %311 = vector.broadcast %cst_54 : f32 to vector<2x16xf32>
    %312 = arith.subf %311, %305 : vector<2x16xf32>
    %313 = arith.mulf %312, %310 : vector<2x16xf32>
    %314 = arith.mulf %305, %255 : vector<2x16xf32>
    %315 = arith.addf %313, %314 : vector<2x16xf32>
    %316 = vector.extract_strided_slice %5 {offsets = [10, 0], sizes = [2, 48], strides = [1, 1]} : vector<16x48xf32> to vector<2x48xf32>
    %317 = tpu.concatenate %287, %315 in 1 : vector<2x16xf32>, vector<2x16xf32> -> vector<2x32xf32>
    %cst_55 = arith.constant dense<0.000000e+00> : vector<2x96xf32>
    %318 = tpu.matmul %317, %12, %cst_55 {dimension_numbers = #tpu.dot_dimension_numbers<[1], [0], [0], [1], [0, 0, 1, 1], [], []>} : vector<2x32xf32>, vector<32x96xf32>, vector<2x96xf32> -> vector<2x96xf32>
    %319 = arith.addf %318, %11 : vector<2x96xf32>
    %320 = vector.extract_strided_slice %319 {offsets = [0, 0], sizes = [2, 48], strides = [1, 1]} : vector<2x96xf32> to vector<2x48xf32>
    %321 = vector.extract_strided_slice %319 {offsets = [0, 48], sizes = [2, 48], strides = [1, 1]} : vector<2x96xf32> to vector<2x48xf32>
    %322 = vector.extract_strided_slice %316 {offsets = [0, 0], sizes = [2, 16], strides = [1, 1]} : vector<2x48xf32> to vector<2x16xf32>
    %323 = vector.extract_strided_slice %320 {offsets = [0, 0], sizes = [2, 16], strides = [1, 1]} : vector<2x48xf32> to vector<2x16xf32>
    %324 = arith.addf %322, %323 : vector<2x16xf32>
    %325 = arith.negf %324 : vector<2x16xf32>
    %326 = math.exp %325 : vector<2x16xf32>
    %cst_56 = arith.constant 1.000000e+00 : f32
    %327 = vector.broadcast %cst_56 : f32 to vector<2x16xf32>
    %328 = arith.addf %327, %326 : vector<2x16xf32>
    %329 = arith.divf %327, %328 : vector<2x16xf32>
    %330 = vector.extract_strided_slice %316 {offsets = [0, 16], sizes = [2, 16], strides = [1, 1]} : vector<2x48xf32> to vector<2x16xf32>
    %331 = vector.extract_strided_slice %320 {offsets = [0, 16], sizes = [2, 16], strides = [1, 1]} : vector<2x48xf32> to vector<2x16xf32>
    %332 = arith.addf %330, %331 : vector<2x16xf32>
    %333 = arith.negf %332 : vector<2x16xf32>
    %334 = math.exp %333 : vector<2x16xf32>
    %cst_57 = arith.constant 1.000000e+00 : f32
    %335 = vector.broadcast %cst_57 : f32 to vector<2x16xf32>
    %336 = arith.addf %335, %334 : vector<2x16xf32>
    %337 = arith.divf %335, %336 : vector<2x16xf32>
    %338 = vector.extract_strided_slice %316 {offsets = [0, 32], sizes = [2, 16], strides = [1, 1]} : vector<2x48xf32> to vector<2x16xf32>
    %339 = vector.extract_strided_slice %320 {offsets = [0, 32], sizes = [2, 16], strides = [1, 1]} : vector<2x48xf32> to vector<2x16xf32>
    %340 = arith.mulf %329, %339 : vector<2x16xf32>
    %341 = arith.addf %338, %340 : vector<2x16xf32>
    %342 = math.tanh %341 : vector<2x16xf32>
    %cst_58 = arith.constant 1.000000e+00 : f32
    %343 = vector.broadcast %cst_58 : f32 to vector<2x16xf32>
    %344 = arith.subf %343, %337 : vector<2x16xf32>
    %345 = arith.mulf %344, %342 : vector<2x16xf32>
    %346 = arith.mulf %337, %287 : vector<2x16xf32>
    %347 = arith.addf %345, %346 : vector<2x16xf32>
    %cst_59 = arith.constant dense<0.000000e+00> : vector<2x48xf32>
    %348 = tpu.matmul %347, %13, %cst_59 {dimension_numbers = #tpu.dot_dimension_numbers<[1], [0], [0], [1], [0, 0, 1, 1], [], []>} : vector<2x16xf32>, vector<16x48xf32>, vector<2x48xf32> -> vector<2x48xf32>
    %349 = arith.addf %348, %8 : vector<2x48xf32>
    %350 = vector.extract_strided_slice %349 {offsets = [0, 0], sizes = [2, 16], strides = [1, 1]} : vector<2x48xf32> to vector<2x16xf32>
    %351 = vector.extract_strided_slice %321 {offsets = [0, 0], sizes = [2, 16], strides = [1, 1]} : vector<2x48xf32> to vector<2x16xf32>
    %352 = arith.addf %350, %351 : vector<2x16xf32>
    %353 = arith.negf %352 : vector<2x16xf32>
    %354 = math.exp %353 : vector<2x16xf32>
    %cst_60 = arith.constant 1.000000e+00 : f32
    %355 = vector.broadcast %cst_60 : f32 to vector<2x16xf32>
    %356 = arith.addf %355, %354 : vector<2x16xf32>
    %357 = arith.divf %355, %356 : vector<2x16xf32>
    %358 = vector.extract_strided_slice %349 {offsets = [0, 16], sizes = [2, 16], strides = [1, 1]} : vector<2x48xf32> to vector<2x16xf32>
    %359 = vector.extract_strided_slice %321 {offsets = [0, 16], sizes = [2, 16], strides = [1, 1]} : vector<2x48xf32> to vector<2x16xf32>
    %360 = arith.addf %358, %359 : vector<2x16xf32>
    %361 = arith.negf %360 : vector<2x16xf32>
    %362 = math.exp %361 : vector<2x16xf32>
    %cst_61 = arith.constant 1.000000e+00 : f32
    %363 = vector.broadcast %cst_61 : f32 to vector<2x16xf32>
    %364 = arith.addf %363, %362 : vector<2x16xf32>
    %365 = arith.divf %363, %364 : vector<2x16xf32>
    %366 = vector.extract_strided_slice %349 {offsets = [0, 32], sizes = [2, 16], strides = [1, 1]} : vector<2x48xf32> to vector<2x16xf32>
    %367 = vector.extract_strided_slice %321 {offsets = [0, 32], sizes = [2, 16], strides = [1, 1]} : vector<2x48xf32> to vector<2x16xf32>
    %368 = arith.mulf %357, %367 : vector<2x16xf32>
    %369 = arith.addf %366, %368 : vector<2x16xf32>
    %370 = math.tanh %369 : vector<2x16xf32>
    %cst_62 = arith.constant 1.000000e+00 : f32
    %371 = vector.broadcast %cst_62 : f32 to vector<2x16xf32>
    %372 = arith.subf %371, %365 : vector<2x16xf32>
    %373 = arith.mulf %372, %370 : vector<2x16xf32>
    %374 = arith.mulf %365, %315 : vector<2x16xf32>
    %375 = arith.addf %373, %374 : vector<2x16xf32>
    %376 = vector.extract_strided_slice %5 {offsets = [12, 0], sizes = [2, 48], strides = [1, 1]} : vector<16x48xf32> to vector<2x48xf32>
    %377 = tpu.concatenate %347, %375 in 1 : vector<2x16xf32>, vector<2x16xf32> -> vector<2x32xf32>
    %cst_63 = arith.constant dense<0.000000e+00> : vector<2x96xf32>
    %378 = tpu.matmul %377, %12, %cst_63 {dimension_numbers = #tpu.dot_dimension_numbers<[1], [0], [0], [1], [0, 0, 1, 1], [], []>} : vector<2x32xf32>, vector<32x96xf32>, vector<2x96xf32> -> vector<2x96xf32>
    %379 = arith.addf %378, %11 : vector<2x96xf32>
    %380 = vector.extract_strided_slice %379 {offsets = [0, 0], sizes = [2, 48], strides = [1, 1]} : vector<2x96xf32> to vector<2x48xf32>
    %381 = vector.extract_strided_slice %379 {offsets = [0, 48], sizes = [2, 48], strides = [1, 1]} : vector<2x96xf32> to vector<2x48xf32>
    %382 = vector.extract_strided_slice %376 {offsets = [0, 0], sizes = [2, 16], strides = [1, 1]} : vector<2x48xf32> to vector<2x16xf32>
    %383 = vector.extract_strided_slice %380 {offsets = [0, 0], sizes = [2, 16], strides = [1, 1]} : vector<2x48xf32> to vector<2x16xf32>
    %384 = arith.addf %382, %383 : vector<2x16xf32>
    %385 = arith.negf %384 : vector<2x16xf32>
    %386 = math.exp %385 : vector<2x16xf32>
    %cst_64 = arith.constant 1.000000e+00 : f32
    %387 = vector.broadcast %cst_64 : f32 to vector<2x16xf32>
    %388 = arith.addf %387, %386 : vector<2x16xf32>
    %389 = arith.divf %387, %388 : vector<2x16xf32>
    %390 = vector.extract_strided_slice %376 {offsets = [0, 16], sizes = [2, 16], strides = [1, 1]} : vector<2x48xf32> to vector<2x16xf32>
    %391 = vector.extract_strided_slice %380 {offsets = [0, 16], sizes = [2, 16], strides = [1, 1]} : vector<2x48xf32> to vector<2x16xf32>
    %392 = arith.addf %390, %391 : vector<2x16xf32>
    %393 = arith.negf %392 : vector<2x16xf32>
    %394 = math.exp %393 : vector<2x16xf32>
    %cst_65 = arith.constant 1.000000e+00 : f32
    %395 = vector.broadcast %cst_65 : f32 to vector<2x16xf32>
    %396 = arith.addf %395, %394 : vector<2x16xf32>
    %397 = arith.divf %395, %396 : vector<2x16xf32>
    %398 = vector.extract_strided_slice %376 {offsets = [0, 32], sizes = [2, 16], strides = [1, 1]} : vector<2x48xf32> to vector<2x16xf32>
    %399 = vector.extract_strided_slice %380 {offsets = [0, 32], sizes = [2, 16], strides = [1, 1]} : vector<2x48xf32> to vector<2x16xf32>
    %400 = arith.mulf %389, %399 : vector<2x16xf32>
    %401 = arith.addf %398, %400 : vector<2x16xf32>
    %402 = math.tanh %401 : vector<2x16xf32>
    %cst_66 = arith.constant 1.000000e+00 : f32
    %403 = vector.broadcast %cst_66 : f32 to vector<2x16xf32>
    %404 = arith.subf %403, %397 : vector<2x16xf32>
    %405 = arith.mulf %404, %402 : vector<2x16xf32>
    %406 = arith.mulf %397, %347 : vector<2x16xf32>
    %407 = arith.addf %405, %406 : vector<2x16xf32>
    %cst_67 = arith.constant dense<0.000000e+00> : vector<2x48xf32>
    %408 = tpu.matmul %407, %13, %cst_67 {dimension_numbers = #tpu.dot_dimension_numbers<[1], [0], [0], [1], [0, 0, 1, 1], [], []>} : vector<2x16xf32>, vector<16x48xf32>, vector<2x48xf32> -> vector<2x48xf32>
    %409 = arith.addf %408, %8 : vector<2x48xf32>
    %410 = vector.extract_strided_slice %409 {offsets = [0, 0], sizes = [2, 16], strides = [1, 1]} : vector<2x48xf32> to vector<2x16xf32>
    %411 = vector.extract_strided_slice %381 {offsets = [0, 0], sizes = [2, 16], strides = [1, 1]} : vector<2x48xf32> to vector<2x16xf32>
    %412 = arith.addf %410, %411 : vector<2x16xf32>
    %413 = arith.negf %412 : vector<2x16xf32>
    %414 = math.exp %413 : vector<2x16xf32>
    %cst_68 = arith.constant 1.000000e+00 : f32
    %415 = vector.broadcast %cst_68 : f32 to vector<2x16xf32>
    %416 = arith.addf %415, %414 : vector<2x16xf32>
    %417 = arith.divf %415, %416 : vector<2x16xf32>
    %418 = vector.extract_strided_slice %409 {offsets = [0, 16], sizes = [2, 16], strides = [1, 1]} : vector<2x48xf32> to vector<2x16xf32>
    %419 = vector.extract_strided_slice %381 {offsets = [0, 16], sizes = [2, 16], strides = [1, 1]} : vector<2x48xf32> to vector<2x16xf32>
    %420 = arith.addf %418, %419 : vector<2x16xf32>
    %421 = arith.negf %420 : vector<2x16xf32>
    %422 = math.exp %421 : vector<2x16xf32>
    %cst_69 = arith.constant 1.000000e+00 : f32
    %423 = vector.broadcast %cst_69 : f32 to vector<2x16xf32>
    %424 = arith.addf %423, %422 : vector<2x16xf32>
    %425 = arith.divf %423, %424 : vector<2x16xf32>
    %426 = vector.extract_strided_slice %409 {offsets = [0, 32], sizes = [2, 16], strides = [1, 1]} : vector<2x48xf32> to vector<2x16xf32>
    %427 = vector.extract_strided_slice %381 {offsets = [0, 32], sizes = [2, 16], strides = [1, 1]} : vector<2x48xf32> to vector<2x16xf32>
    %428 = arith.mulf %417, %427 : vector<2x16xf32>
    %429 = arith.addf %426, %428 : vector<2x16xf32>
    %430 = math.tanh %429 : vector<2x16xf32>
    %cst_70 = arith.constant 1.000000e+00 : f32
    %431 = vector.broadcast %cst_70 : f32 to vector<2x16xf32>
    %432 = arith.subf %431, %425 : vector<2x16xf32>
    %433 = arith.mulf %432, %430 : vector<2x16xf32>
    %434 = arith.mulf %425, %375 : vector<2x16xf32>
    %435 = arith.addf %433, %434 : vector<2x16xf32>
    %436 = vector.extract_strided_slice %5 {offsets = [14, 0], sizes = [2, 48], strides = [1, 1]} : vector<16x48xf32> to vector<2x48xf32>
    %437 = tpu.concatenate %407, %435 in 1 : vector<2x16xf32>, vector<2x16xf32> -> vector<2x32xf32>
    %cst_71 = arith.constant dense<0.000000e+00> : vector<2x96xf32>
    %438 = tpu.matmul %437, %12, %cst_71 {dimension_numbers = #tpu.dot_dimension_numbers<[1], [0], [0], [1], [0, 0, 1, 1], [], []>} : vector<2x32xf32>, vector<32x96xf32>, vector<2x96xf32> -> vector<2x96xf32>
    %439 = arith.addf %438, %11 : vector<2x96xf32>
    %440 = vector.extract_strided_slice %439 {offsets = [0, 0], sizes = [2, 48], strides = [1, 1]} : vector<2x96xf32> to vector<2x48xf32>
    %441 = vector.extract_strided_slice %439 {offsets = [0, 48], sizes = [2, 48], strides = [1, 1]} : vector<2x96xf32> to vector<2x48xf32>
    %442 = vector.extract_strided_slice %436 {offsets = [0, 0], sizes = [2, 16], strides = [1, 1]} : vector<2x48xf32> to vector<2x16xf32>
    %443 = vector.extract_strided_slice %440 {offsets = [0, 0], sizes = [2, 16], strides = [1, 1]} : vector<2x48xf32> to vector<2x16xf32>
    %444 = arith.addf %442, %443 : vector<2x16xf32>
    %445 = arith.negf %444 : vector<2x16xf32>
    %446 = math.exp %445 : vector<2x16xf32>
    %cst_72 = arith.constant 1.000000e+00 : f32
    %447 = vector.broadcast %cst_72 : f32 to vector<2x16xf32>
    %448 = arith.addf %447, %446 : vector<2x16xf32>
    %449 = arith.divf %447, %448 : vector<2x16xf32>
    %450 = vector.extract_strided_slice %436 {offsets = [0, 16], sizes = [2, 16], strides = [1, 1]} : vector<2x48xf32> to vector<2x16xf32>
    %451 = vector.extract_strided_slice %440 {offsets = [0, 16], sizes = [2, 16], strides = [1, 1]} : vector<2x48xf32> to vector<2x16xf32>
    %452 = arith.addf %450, %451 : vector<2x16xf32>
    %453 = arith.negf %452 : vector<2x16xf32>
    %454 = math.exp %453 : vector<2x16xf32>
    %cst_73 = arith.constant 1.000000e+00 : f32
    %455 = vector.broadcast %cst_73 : f32 to vector<2x16xf32>
    %456 = arith.addf %455, %454 : vector<2x16xf32>
    %457 = arith.divf %455, %456 : vector<2x16xf32>
    %458 = vector.extract_strided_slice %436 {offsets = [0, 32], sizes = [2, 16], strides = [1, 1]} : vector<2x48xf32> to vector<2x16xf32>
    %459 = vector.extract_strided_slice %440 {offsets = [0, 32], sizes = [2, 16], strides = [1, 1]} : vector<2x48xf32> to vector<2x16xf32>
    %460 = arith.mulf %449, %459 : vector<2x16xf32>
    %461 = arith.addf %458, %460 : vector<2x16xf32>
    %462 = math.tanh %461 : vector<2x16xf32>
    %cst_74 = arith.constant 1.000000e+00 : f32
    %463 = vector.broadcast %cst_74 : f32 to vector<2x16xf32>
    %464 = arith.subf %463, %457 : vector<2x16xf32>
    %465 = arith.mulf %464, %462 : vector<2x16xf32>
    %466 = arith.mulf %457, %407 : vector<2x16xf32>
    %467 = arith.addf %465, %466 : vector<2x16xf32>
    %cst_75 = arith.constant dense<0.000000e+00> : vector<2x48xf32>
    %468 = tpu.matmul %467, %13, %cst_75 {dimension_numbers = #tpu.dot_dimension_numbers<[1], [0], [0], [1], [0, 0, 1, 1], [], []>} : vector<2x16xf32>, vector<16x48xf32>, vector<2x48xf32> -> vector<2x48xf32>
    %469 = arith.addf %468, %8 : vector<2x48xf32>
    %470 = vector.extract_strided_slice %469 {offsets = [0, 0], sizes = [2, 16], strides = [1, 1]} : vector<2x48xf32> to vector<2x16xf32>
    %471 = vector.extract_strided_slice %441 {offsets = [0, 0], sizes = [2, 16], strides = [1, 1]} : vector<2x48xf32> to vector<2x16xf32>
    %472 = arith.addf %470, %471 : vector<2x16xf32>
    %473 = arith.negf %472 : vector<2x16xf32>
    %474 = math.exp %473 : vector<2x16xf32>
    %cst_76 = arith.constant 1.000000e+00 : f32
    %475 = vector.broadcast %cst_76 : f32 to vector<2x16xf32>
    %476 = arith.addf %475, %474 : vector<2x16xf32>
    %477 = arith.divf %475, %476 : vector<2x16xf32>
    %478 = vector.extract_strided_slice %469 {offsets = [0, 16], sizes = [2, 16], strides = [1, 1]} : vector<2x48xf32> to vector<2x16xf32>
    %479 = vector.extract_strided_slice %441 {offsets = [0, 16], sizes = [2, 16], strides = [1, 1]} : vector<2x48xf32> to vector<2x16xf32>
    %480 = arith.addf %478, %479 : vector<2x16xf32>
    %481 = arith.negf %480 : vector<2x16xf32>
    %482 = math.exp %481 : vector<2x16xf32>
    %cst_77 = arith.constant 1.000000e+00 : f32
    %483 = vector.broadcast %cst_77 : f32 to vector<2x16xf32>
    %484 = arith.addf %483, %482 : vector<2x16xf32>
    %485 = arith.divf %483, %484 : vector<2x16xf32>
    %486 = vector.extract_strided_slice %469 {offsets = [0, 32], sizes = [2, 16], strides = [1, 1]} : vector<2x48xf32> to vector<2x16xf32>
    %487 = vector.extract_strided_slice %441 {offsets = [0, 32], sizes = [2, 16], strides = [1, 1]} : vector<2x48xf32> to vector<2x16xf32>
    %488 = arith.mulf %477, %487 : vector<2x16xf32>
    %489 = arith.addf %486, %488 : vector<2x16xf32>
    %490 = math.tanh %489 : vector<2x16xf32>
    %cst_78 = arith.constant 1.000000e+00 : f32
    %491 = vector.broadcast %cst_78 : f32 to vector<2x16xf32>
    %492 = arith.subf %491, %485 : vector<2x16xf32>
    %493 = arith.mulf %492, %490 : vector<2x16xf32>
    %494 = arith.mulf %485, %435 : vector<2x16xf32>
    %495 = arith.addf %493, %494 : vector<2x16xf32>
    %c0_79 = arith.constant 0 : index
    %c0_80 = arith.constant 0 : index
    %496 = vector.load %arg7[%c0_79, %c0_80] : memref<16x5xf32, #tpu.memory_space<vmem>>, vector<16x5xf32>
    %cst_81 = arith.constant dense<0.000000e+00> : vector<2x5xf32>
    %497 = tpu.matmul %495, %496, %cst_81 {dimension_numbers = #tpu.dot_dimension_numbers<[1], [0], [0], [1], [0, 0, 1, 1], [], []>} : vector<2x16xf32>, vector<16x5xf32>, vector<2x5xf32> -> vector<2x5xf32>
    %c0_82 = arith.constant 0 : index
    %c0_83 = arith.constant 0 : index
    %498 = vector.load %arg8[%c0_82, %c0_83] : memref<1x5xf32, #tpu.memory_space<vmem>>, vector<1x5xf32>
    %499 = vector.broadcast %498 : vector<1x5xf32> to vector<2x5xf32>
    %500 = arith.addf %497, %499 : vector<2x5xf32>
    %c0_84 = arith.constant 0 : index
    %c0_85 = arith.constant 0 : index
    %501 = vector.load %arg9[%c0_84, %c0_85] : memref<2x5xf32, #tpu.memory_space<vmem>>, vector<2x5xf32>
    tpu.vector_store %arg9[%c0_84, %c0_85], %500 {strides = array<i32>} : memref<2x5xf32, #tpu.memory_space<vmem>>, vector<2x5xf32>,
    return
  }
}

</mosaic_0001>

<bundles_post_ra>
// kernel: sleep_rnn3_forward.1
= control target key start
LH: loop header
LB: loop body
LE: loop exit
PB: predicated region body
PF: predicated region fallthrough
CT: control target
= control target key end

     0   :  { %vm47_vm0 = vcmask 1045504   ;;  %vm40_vm1 = vcmask 48128   ;;  %s1789_s0 = inlined_call_operand.vmem [shape: f32[16,6], index: 0, kind: input, shape index: {}]   ;;  %s1790_s1 = inlined_call_operand.vmem [shape: f32[6,48], index: 1, kind: input, shape index: {}]   ;;  %s1791_s2 = inlined_call_operand.vmem [shape: f32[1,48], index: 2, kind: input, shape index: {}]   ;;  %s1792_s3 = inlined_call_operand.vmem [shape: f32[32,96], index: 3, kind: input, shape index: {}]   ;;  %s1793_s4 = inlined_call_operand.vmem [shape: f32[1,96], index: 4, kind: input, shape index: {}]   ;;  %s1794_s5 = inlined_call_operand.vmem [shape: f32[16,48], index: 5, kind: input, shape index: {}]   ;;  %s1795_s6 = inlined_call_operand.vmem [shape: f32[1,48], index: 6, kind: input, shape index: {}]   ;;  %s1796_s7 = inlined_call_operand.vmem [shape: f32[16,5], index: 7, kind: input, shape index: {}]   ;;  %s1797_s8 = inlined_call_operand.vmem [shape: f32[1,5], index: 8, kind: input, shape index: {}]   ;;  %s1798_s9 = inlined_call_operand.hbm [shape: f32[2,5], index: 9, kind: output, shape index: {}]  }
   0x1   :  { %v1468_v0 = vld [vmem:[%s1792_s3 + $0x18] sm:$0xff]  ;;  %v1473_v1 = vld [vmem:[%s1792_s3 + $0x10] sm:$0xff]  ;;  %v35_v2 = vld [vmem:[%s1790_s1] sm:$0x3f] }
   0x2   :  { %104 = vmatpush.msra.mxu1 %v1468_v0  ;;  %v33_v3 = vld [vmem:[%s1789_s0] sm:$0xff]  ;;  %235 = vmatpush.msra.mxu3 %v1468_v0  ;;  %v1486_v4 = vld [vmem:[%s1792_s3 + $0x8] sm:$0xff] }
   0x3   :  { %1238 = vmatpush.msk.msra.mxu0 %vm47_vm0, %v35_v2 }
   0x4   :  { %105 = vmatpush.msra.mxu1 %v1473_v1  ;;  %1239 = vmatmul.msk.f32.vlgmr.msra.gmra.mxu0 %vm40_vm1, %v33_v3 }
   0x5   :  { %14 = vsyncpa [#allocation3], 0  ;;  %v1493_v5 = vld [vmem:[%s1792_s3] sm:$0xff]  ;;  %236 = vmatpush.msra.mxu3 %v1473_v1  ;;  %517 = vmatpush.msrb.mxu0 %v1468_v0  ;;  %v1408_v6 = vmov 0.0   ;;  %s1409_s21 = smov 80   ;;  %s1410_s22 = smov 96  }
   0x6   :  { %106 = vmatpush.msra.mxu1 %v1486_v4  ;;  %v1519_v7 = vld [vmem:[%s1793_s4] ss:$0 sm:$0xff]  ;;  %s1411_s23 = smov 48   ;;  %s1413_s26 = smov 112   ;;  %v1540_v32 = vld [vmem:[%s1794_s5 + $0x8] sm:$0xff]  ;;  %vm154_vm6 = vcmask 130048  }
   0x7   :  { %237 = vmatpush.msra.mxu3 %v1486_v4  ;;  %518 = vmatpush.msrb.mxu0 %v1473_v1  ;;  %v1528_v10 = vld [vmem:[%s1791_s2] ss:$0 sm:$0xff]  ;;  %s1412_s2 = smov 32   ;;  %vm88_vm11 = vcmask 261120   ;;  %s1414_s20 = smov [#allocation2]  }
   0x8   :  { %107 = vmatpush.msra.mxu1 %v1493_v5  ;;  %v1545_v33 = vld [vmem:[%s1794_s5] sm:$0xff]  ;;  %171 = vmatpush.msra.mxu2 %v1540_v32  ;;  %s1227_s1 = sshll.u32 %s1414_s20, 4  ;;  %s1228_s1 = int_to_ptr.vmem [resolvable:$true] %s1227_s1 }
   0x9   :  { %108 = vmatmul.f32.vlgmr.msra.gmra.mxu1 %v1408_v6  ;;  %238 = vmatpush.msra.mxu3 %v1493_v5  ;;  %v1563_v40 = vld [vmem:[%s1795_s6] ss:$0 sm:$0xff] }
   0xa   :  { %376 = vmatpush.msrb.mxu1 %v1468_v0  ;;  %519 = vmatpush.msrb.mxu0 %v1486_v4 }
   0xb   :  { %447 = vmatpush.msrb.mxu3 %v1540_v32  ;;  %172 = vmatpush.msra.mxu2 %v1545_v33 }
   0xc   :  { %377 = vmatpush.msrb.mxu1 %v1473_v1  ;;  %520 = vmatpush.msrb.mxu0 %v1493_v5 }
   0xd   :  { %448 = vmatpush.msrb.mxu3 %v1545_v33  ;;  %306 = vmatpush.msrb.mxu2 %v1540_v32 }
   0xe   :  { %789 = vmatpush.msra.mxu0 %v1468_v0  ;;  %378 = vmatpush.msrb.mxu1 %v1486_v4 }
   0xf   :  { %307 = vmatpush.msrb.mxu2 %v1545_v33 }
  0x10   :  { %790 = vmatpush.msra.mxu0 %v1473_v1  ;;  %379 = vmatpush.msrb.mxu1 %v1493_v5 }
  0x12   :  { %658 = vmatpush.msra.mxu1 %v1468_v0  ;;  %791 = vmatpush.msra.mxu0 %v1486_v4 }
  0x14   :  { %659 = vmatpush.msra.mxu1 %v1473_v1  ;;  %792 = vmatpush.msra.mxu0 %v1493_v5 }
  0x16   :  { %660 = vmatpush.msra.mxu1 %v1486_v4 }
  0x18   :  { %661 = vmatpush.msra.mxu1 %v1493_v5 }
  0x81   :  { %v68_v11 = vpop.f32.mrf.mxu0 }
  0x82   :  { %v1531_v12 = vadd.f32 %v1528_v10, %v68_v11 }
  0x86   :  { %v109_v8 = vpop.f32.mrf.mxu1 }
  0x87   :  { %v110_v9 = vadd.f32 %v1519_v7, %v109_v8 }
  0x89   :  { %177 = vrot.lane.b32.xlu2 %v110_v9, %s1409_s21  ;;  %133 = vrot.lane.b32.xlu0 %v110_v9, %s1410_s22  ;;  %v112_v13 = vadd.f32 %v110_v9, %v1531_v12 }
  0x8b   :  { %v1241_v14 = vmul.f32 -1.442695, %v112_v13 }
  0x8d   :  { %1284 = vpow2.f32 %v1241_v14 }
  0x91   :  { %200 = vrot.lane.b32.xlu2 %v110_v9, %s1411_s23 }
  0x93   :  { %v1285_v15 = vpop.eup %1284 }
  0x94   :  { %v116_v16 = vadd.f32 1.0, %v1285_v15 }
  0x96   :  { %1286 = vrcp.f32 %v116_v16  ;;  %v128_v22 = vand.u32 2147483648, %v116_v16  ;;  %vm122_vm3 = vweird.f32 %v116_v16  ;;  %v126_v23 = vand.u32 2147483647, %v116_v16 }
  0x98   :  { %v129_v25 = vor.u32 1.1754944e-38, %v128_v22  ;;  %vm127_vm5 = vcmp.eq.f32.partialorder %v126_v23, 8.507059e+37 }
  0x9c   :  { %v1287_v17 = vpop.eup %1286 }
  0x9d   :  { %v118_v18 = vmul.f32 %v1287_v17, %v116_v16  ;;  %vm123_vm2 = vweird.f32 %v1287_v17 }
  0x9e   :  { %vm124_vm4 = vmor %vm122_vm3, %vm123_vm2 }
  0x9f   :  { %v119_v19 = vsub.f32 1.0, %v118_v18 }
  0xa1   :  { %v120_v20 = vmul.f32 %v1287_v17, %v119_v19 }
  0xa3   :  { %v121_v21 = vadd.f32 %v1287_v17, %v120_v20 }
  0xa5   :  { %v125_v24 = vsel %vm124_vm4, %v1287_v17, %v121_v21 }
  0xa6   :  { %v130_v27 = vsel %vm127_vm5, %v129_v25, %v125_v24 }
  0xa7   :  { %v143_v34 = vsub.f32 1.0, %v130_v27  ;;  %v149_v36 = vmul.f32 0.0, %v130_v27 }
  0xe3   :  { %v178_v43 = vpop.permute.xlu2 %177 }
  0xeb   :  { %v201_v57 = vpop.permute.xlu2 %200 }
  0xfb   :  { %v134_v26 = vpop.permute.xlu0 %133 }
  0xfc   :  { %v136_v28 = vmul.f32 %v134_v26, %v130_v27 }
  0xfe   :  { %138 = vrot.lane.b32.xlu0 %v136_v28, %s1412_s2 }
 0x170   :  { %v139_v29 = vpop.permute.xlu0 %138 }
 0x171   :  { %v141_v30 = vadd.f32 %v139_v29, %v1531_v12 }
 0x173   :  { %1288 = vtanh.f32 %v141_v30 }
 0x179   :  { %v1289_v31 = vpop.eup %1288 }
 0x17a   :  { %145 = vrot.lane.b32.xlu1 %v1289_v31, %s1413_s26 }
 0x1ec   :  { %v146_v35 = vpop.permute.xlu1 %145 }
 0x1ed   :  { %v148_v37 = vmul.f32 %v146_v35, %v143_v34 }
 0x1ef   :  { %v1553_v38 = vadd.f32 %v149_v36, %v148_v37 }
 0x1f1   :  { %152 = vrot.lane.b32.xlu1 %v1553_v38, %s1413_s26  ;;  %v282_v27 = vrot.slane %v1553_v38, 6 }
 0x263   :  { %v153_v39 = vpop.permute.xlu1 %152 }
 0x264   :  { %1242 = vmatmul.msk.f32.vlgmr.msra.gmra.mxu2 %vm154_vm6, %v153_v39 }
 0x265   :  { %588 = vmatpush.msra.mxu2 %v1540_v32 }
 0x267   :  { %589 = vmatpush.msra.mxu2 %v1545_v33 }
 0x2e7   :  { %v174_v41 = vpop.f32.mrf.mxu2 }
 0x2e8   :  { %v175_v42 = vadd.f32 %v1563_v40, %v174_v41 }
 0x2ea   :  { %v180_v44 = vadd.f32 %v178_v43, %v175_v42 }
 0x2ec   :  { %v1243_v45 = vmul.f32 -1.442695, %v180_v44 }
 0x2ee   :  { %1290 = vpow2.f32 %v1243_v45 }
 0x2f4   :  { %v1291_v46 = vpop.eup %1290 }
 0x2f5   :  { %v184_v47 = vadd.f32 1.0, %v1291_v46 }
 0x2f7   :  { %1292 = vrcp.f32 %v184_v47  ;;  %v196_v51 = vand.u32 2147483648, %v184_v47  ;;  %v194_v53 = vand.u32 2147483647, %v184_v47  ;;  %vm190_vm8 = vweird.f32 %v184_v47 }
 0x2f9   :  { %v197_v55 = vor.u32 1.1754944e-38, %v196_v51  ;;  %vm195_vm10 = vcmp.eq.f32.partialorder %v194_v53, 8.507059e+37 }
 0x2fd   :  { %v1293_v48 = vpop.eup %1292 }
 0x2fe   :  { %v186_v49 = vmul.f32 %v1293_v48, %v184_v47  ;;  %vm191_vm7 = vweird.f32 %v1293_v48 }
 0x2ff   :  { %vm192_vm9 = vmor %vm190_vm8, %vm191_vm7 }
 0x300   :  { %v187_v50 = vsub.f32 1.0, %v186_v49 }
 0x302   :  { %v188_v52 = vmul.f32 %v1293_v48, %v187_v50 }
 0x304   :  { %v189_v54 = vadd.f32 %v1293_v48, %v188_v52 }
 0x306   :  { %v193_v56 = vsel %vm192_vm9, %v1293_v48, %v189_v54 }
 0x307   :  { %v198_v58 = vsel %vm195_vm10, %v197_v55, %v193_v56 }
 0x308   :  { %v203_v59 = vmul.f32 %v201_v57, %v198_v58  ;;  %v210_v63 = vsub.f32 1.0, %v198_v58  ;;  %v216_v3 = vmul.f32 0.0, %v198_v58 }
 0x30a   :  { %205 = vrot.lane.b32.xlu0 %v203_v59, %s1412_s2 }
 0x37c   :  { %v206_v60 = vpop.permute.xlu0 %205 }
 0x37d   :  { %v208_v61 = vadd.f32 %v206_v60, %v175_v42 }
 0x37f   :  { %1294 = vtanh.f32 %v208_v61 }
 0x385   :  { %v1295_v62 = vpop.eup %1294 }
 0x386   :  { %212 = vrot.lane.b32.xlu1 %v1295_v62, %s1413_s26 }
 0x3f8   :  { %v213_v2 = vpop.permute.xlu1 %212 }
 0x3f9   :  { %v215_v6 = vmul.f32 %v213_v2, %v210_v63 }
 0x3fb   :  { %v1568_v8 = vadd.f32 %v216_v3, %v215_v6 }
 0x3fd   :  { %v219_v9 = vsel %vm154_vm6, %v153_v39, %v1568_v8 }
 0x3fe   :  { %1244 = vmatmul.msk.f32.vlgmr.msra.gmra.mxu3 %vm88_vm11, %v219_v9 }
 0x3ff   :  { %725 = vmatpush.msra.mxu3 %v1540_v32 }
 0x401   :  { %726 = vmatpush.msra.mxu3 %v1545_v33 }
 0x481   :  { %v240_v11 = vpop.f32.mrf.mxu3 }
 0x482   :  { %v241_v13 = vadd.f32 %v1519_v7, %v240_v11 }
 0x484   :  { %v244_v14 = vrot.slane %v241_v13, 6 }
 0x486   :  { %266 = vrot.lane.b32.xlu2 %v244_v14, %s1410_s22  ;;  %v246_v15 = vadd.f32 %v244_v14, %v1531_v12 }
 0x488   :  { %v1245_v16 = vmul.f32 -1.442695, %v246_v15 }
 0x48a   :  { %1296 = vpow2.f32 %v1245_v16 }
 0x490   :  { %v1297_v17 = vpop.eup %1296 }
 0x491   :  { %v250_v18 = vadd.f32 1.0, %v1297_v17 }
 0x493   :  { %1298 = vrcp.f32 %v250_v18  ;;  %v262_v22 = vand.u32 2147483648, %v250_v18  ;;  %v260_v24 = vand.u32 2147483647, %v250_v18  ;;  %vm256_vm13 = vweird.f32 %v250_v18 }
 0x495   :  { %v263_v26 = vor.u32 1.1754944e-38, %v262_v22  ;;  %vm261_vm15 = vcmp.eq.f32.partialorder %v260_v24, 8.507059e+37 }
 0x499   :  { %v1299_v19 = vpop.eup %1298 }
 0x49a   :  { %v252_v20 = vmul.f32 %v1299_v19, %v250_v18  ;;  %vm257_vm12 = vweird.f32 %v1299_v19 }
 0x49b   :  { %vm258_vm14 = vmor %vm256_vm13, %vm257_vm12 }
 0x49c   :  { %v253_v21 = vsub.f32 1.0, %v252_v20 }
 0x49e   :  { %v254_v23 = vmul.f32 %v1299_v19, %v253_v21 }
 0x4a0   :  { %v255_v25 = vadd.f32 %v1299_v19, %v254_v23 }
 0x4a2   :  { %v259_v28 = vsel %vm258_vm14, %v1299_v19, %v255_v25 }
 0x4a3   :  { %v264_v29 = vsel %vm261_vm15, %v263_v26, %v259_v28 }
 0x4a4   :  { %v284_v30 = vmul.f32 %v282_v27, %v264_v29  ;;  %v276_v38 = vsub.f32 1.0, %v264_v29 }
 0x4e0   :  { %v267_v31 = vpop.permute.xlu2 %266 }
 0x4e1   :  { %v269_v34 = vmul.f32 %v267_v31, %v264_v29 }
 0x4e3   :  { %271 = vrot.lane.b32.xlu0 %v269_v34, %s1412_s2 }
 0x4eb   :  { %312 = vrot.lane.b32.xlu0 %v241_v13, %s1409_s21 }
 0x555   :  { %v272_v35 = vpop.permute.xlu0 %271 }
 0x556   :  { %v274_v36 = vadd.f32 %v272_v35, %v1531_v12 }
 0x558   :  { %1300 = vtanh.f32 %v274_v36 }
 0x55d   :  { %v313_v47 = vpop.permute.xlu0 %312 }
 0x55e   :  { %v1301_v37 = vpop.eup %1300 }
 0x55f   :  { %278 = vrot.lane.b32.xlu1 %v1301_v37, %s1413_s26 }
 0x567   :  { %335 = vrot.lane.b32.xlu1 %v241_v13, %s1411_s23 }
 0x5d1   :  { %v279_v39 = vpop.permute.xlu1 %278 }
 0x5d2   :  { %v281_v41 = vmul.f32 %v279_v39, %v276_v38 }
 0x5d4   :  { %v1584_v42 = vadd.f32 %v284_v30, %v281_v41 }
 0x5d6   :  { %353 = vrot.lane.b32.xlu1 %v1584_v42, %s1413_s26  ;;  %v287_v43 = vrot.slane %v1584_v42, 2  ;;  %v423_v37 = vrot.slane %v1584_v42, 6 }
 0x5d8   :  { %288 = vrot.lane.b32.xlu2 %v287_v43, %s1413_s26 }
 0x5d9   :  { %v336_v61 = vpop.permute.xlu1 %335 }
 0x632   :  { %v289_v44 = vpop.permute.xlu2 %288 }
 0x633   :  { %1246 = vmatmul.msk.f32.vlgmr.msrb.gmra.mxu2 %vm154_vm6, %v289_v44 }
 0x634   :  { %860 = vmatpush.msrb.mxu2 %v1540_v32 }
 0x636   :  { %861 = vmatpush.msrb.mxu2 %v1545_v33 }
 0x648   :  { %v354_v17 = vpop.permute.xlu1 %353 }
 0x6b6   :  { %v309_v45 = vpop.f32.mrf.mxu2 }
 0x6b7   :  { %v310_v46 = vadd.f32 %v1563_v40, %v309_v45 }
 0x6b9   :  { %v315_v48 = vadd.f32 %v313_v47, %v310_v46 }
 0x6bb   :  { %v1247_v49 = vmul.f32 -1.442695, %v315_v48 }
 0x6bd   :  { %1302 = vpow2.f32 %v1247_v49 }
 0x6c3   :  { %v1303_v50 = vpop.eup %1302 }
 0x6c4   :  { %v319_v51 = vadd.f32 1.0, %v1303_v50 }
 0x6c6   :  { %1304 = vrcp.f32 %v319_v51  ;;  %v331_v55 = vand.u32 2147483648, %v319_v51  ;;  %v329_v57 = vand.u32 2147483647, %v319_v51  ;;  %vm325_vm2 = vweird.f32 %v319_v51 }
 0x6c8   :  { %v332_v59 = vor.u32 1.1754944e-38, %v331_v55  ;;  %vm330_vm4 = vcmp.eq.f32.partialorder %v329_v57, 8.507059e+37 }
 0x6cc   :  { %v1305_v52 = vpop.eup %1304 }
 0x6cd   :  { %v321_v53 = vmul.f32 %v1305_v52, %v319_v51  ;;  %vm326_vm0 = vweird.f32 %v1305_v52 }
 0x6ce   :  { %vm327_vm3 = vmor %vm325_vm2, %vm326_vm0 }
 0x6cf   :  { %v322_v54 = vsub.f32 1.0, %v321_v53 }
 0x6d1   :  { %v323_v56 = vmul.f32 %v1305_v52, %v322_v54 }
 0x6d3   :  { %v324_v58 = vadd.f32 %v1305_v52, %v323_v56 }
 0x6d5   :  { %v328_v60 = vsel %vm327_vm3, %v1305_v52, %v324_v58 }
 0x6d6   :  { %v333_v62 = vsel %vm330_vm4, %v332_v59, %v328_v60 }
 0x6d7   :  { %v338_v63 = vmul.f32 %v336_v61, %v333_v62  ;;  %v345_v9 = vsub.f32 1.0, %v333_v62  ;;  %v351_v13 = vmul.f32 %v333_v62, %v1568_v8 }
 0x6d9   :  { %340 = vrot.lane.b32.xlu2 %v338_v63, %s1412_s2 }
 0x733   :  { %v341_v2 = vpop.permute.xlu2 %340 }
 0x734   :  { %v343_v3 = vadd.f32 %v341_v2, %v310_v46 }
 0x736   :  { %1306 = vtanh.f32 %v343_v3 }
 0x73c   :  { %v1307_v6 = vpop.eup %1306 }
 0x73d   :  { %347 = vrot.lane.b32.xlu0 %v1307_v6, %s1413_s26 }
 0x7af   :  { %v348_v11 = vpop.permute.xlu0 %347 }
 0x7b0   :  { %v350_v14 = vmul.f32 %v348_v11, %v345_v9 }
 0x7b2   :  { %v1597_v15 = vadd.f32 %v351_v13, %v350_v14 }
 0x7b4   :  { %v357_v16 = vrot.slane %v1597_v15, 6 }
 0x7b6   :  { %v359_v18 = vsel %vm154_vm6, %v354_v17, %v357_v16 }
 0x7b7   :  { %v361_v19 = vrot.slane %v359_v18, 2 }
 0x7b9   :  { %1248 = vmatmul.msk.f32.vlgmr.msrb.gmra.mxu1 %vm88_vm11, %v361_v19  ;;  %v34_v19 = vld [vmem:[%s1789_s0 + $0x8] sm:$0xff] }
 0x7ba   :  { %930 = vmatpush.msrb.mxu1 %v1468_v0  ;;  %1240 = vmatmul.msk.f32.gmra.mxu0 %vm40_vm1, %v34_v19 }
 0x7bc   :  { %931 = vmatpush.msrb.mxu1 %v1473_v1 }
 0x7be   :  { %932 = vmatpush.msrb.mxu1 %v1486_v4 }
 0x7c0   :  { %933 = vmatpush.msrb.mxu1 %v1493_v5 }
 0x836   :  { %v381_v8 = vpop.f32.mrf.mxu1 }
 0x837   :  { %v382_v20 = vadd.f32 %v1519_v7, %v381_v8 }
 0x839   :  { %v385_v21 = vrot.slane %v382_v20, 4 }
 0x83b   :  { %407 = vrot.lane.b32.xlu2 %v385_v21, %s1410_s22  ;;  %v387_v22 = vadd.f32 %v385_v21, %v1531_v12 }
 0x83d   :  { %v1249_v23 = vmul.f32 -1.442695, %v387_v22 }
 0x83f   :  { %1308 = vpow2.f32 %v1249_v23 }
 0x845   :  { %v1309_v24 = vpop.eup %1308 }
 0x846   :  { %v391_v25 = vadd.f32 1.0, %v1309_v24 }
 0x848   :  { %1310 = vrcp.f32 %v391_v25  ;;  %v403_v29 = vand.u32 2147483648, %v391_v25  ;;  %v401_v31 = vand.u32 2147483647, %v391_v25  ;;  %vm397_vm7 = vweird.f32 %v391_v25 }
 0x84a   :  { %v404_v35 = vor.u32 1.1754944e-38, %v403_v29  ;;  %vm402_vm9 = vcmp.eq.f32.partialorder %v401_v31, 8.507059e+37 }
 0x84e   :  { %v1311_v26 = vpop.eup %1310 }
 0x84f   :  { %v393_v27 = vmul.f32 %v1311_v26, %v391_v25  ;;  %vm398_vm5 = vweird.f32 %v1311_v26 }
 0x850   :  { %vm399_vm8 = vmor %vm397_vm7, %vm398_vm5 }
 0x851   :  { %v394_v28 = vsub.f32 1.0, %v393_v27 }
 0x853   :  { %v395_v30 = vmul.f32 %v1311_v26, %v394_v28 }
 0x855   :  { %v396_v34 = vadd.f32 %v1311_v26, %v395_v30 }
 0x857   :  { %v400_v36 = vsel %vm399_vm8, %v1311_v26, %v396_v34 }
 0x858   :  { %v405_v38 = vsel %vm402_vm9, %v404_v35, %v400_v36 }
 0x859   :  { %v425_v39 = vmul.f32 %v423_v37, %v405_v38  ;;  %v417_v47 = vsub.f32 1.0, %v405_v38 }
 0x895   :  { %v408_v41 = vpop.permute.xlu2 %407 }
 0x896   :  { %v410_v43 = vmul.f32 %v408_v41, %v405_v38 }
 0x898   :  { %412 = vrot.lane.b32.xlu0 %v410_v43, %s1412_s2 }
 0x8a0   :  { %453 = vrot.lane.b32.xlu0 %v382_v20, %s1409_s21 }
 0x90a   :  { %v413_v44 = vpop.permute.xlu0 %412 }
 0x90b   :  { %v415_v45 = vadd.f32 %v413_v44, %v1531_v12 }
 0x90d   :  { %1312 = vtanh.f32 %v415_v45 }
 0x912   :  { %v454_v54 = vpop.permute.xlu0 %453 }
 0x913   :  { %v1313_v46 = vpop.eup %1312 }
 0x914   :  { %419 = vrot.lane.b32.xlu1 %v1313_v46, %s1413_s26 }
 0x91c   :  { %476 = vrot.lane.b32.xlu1 %v382_v20, %s1411_s23 }
 0x986   :  { %v420_v48 = vpop.permute.xlu1 %419 }
 0x987   :  { %v422_v42 = vmul.f32 %v420_v48, %v417_v47 }
 0x989   :  { %v1615_v49 = vadd.f32 %v425_v39, %v422_v42 }
 0x98b   :  { %494 = vrot.lane.b32.xlu1 %v1615_v49, %s1413_s26  ;;  %v428_v50 = vrot.slane %v1615_v49, 4  ;;  %v564_v44 = vrot.slane %v1615_v49, 6 }
 0x98d   :  { %429 = vrot.lane.b32.xlu2 %v428_v50, %s1413_s26 }
 0x98e   :  { %v477_v11 = vpop.permute.xlu1 %476 }
 0x9e7   :  { %v430_v51 = vpop.permute.xlu2 %429 }
 0x9e8   :  { %1250 = vmatmul.msk.f32.vlgmr.msrb.gmra.mxu3 %vm154_vm6, %v430_v51 }
 0x9e9   :  { %1001 = vmatpush.msrb.mxu3 %v1540_v32 }
 0x9eb   :  { %1002 = vmatpush.msrb.mxu3 %v1545_v33 }
 0x9fd   :  { %v495_v25 = vpop.permute.xlu1 %494 }
 0xa6b   :  { %v450_v52 = vpop.f32.mrf.mxu3 }
 0xa6c   :  { %v451_v53 = vadd.f32 %v1563_v40, %v450_v52 }
 0xa6e   :  { %v456_v55 = vadd.f32 %v454_v54, %v451_v53 }
 0xa70   :  { %v1251_v56 = vmul.f32 -1.442695, %v456_v55 }
 0xa72   :  { %1314 = vpow2.f32 %v1251_v56 }
 0xa78   :  { %v1315_v57 = vpop.eup %1314 }
 0xa79   :  { %v460_v58 = vadd.f32 1.0, %v1315_v57 }
 0xa7b   :  { %1316 = vrcp.f32 %v460_v58  ;;  %v472_v62 = vand.u32 2147483648, %v460_v58  ;;  %v470_v2 = vand.u32 2147483647, %v460_v58  ;;  %vm466_vm12 = vweird.f32 %v460_v58 }
 0xa7d   :  { %v473_v6 = vor.u32 1.1754944e-38, %v472_v62  ;;  %vm471_vm14 = vcmp.eq.f32.partialorder %v470_v2, 8.507059e+37 }
 0xa81   :  { %v1317_v59 = vpop.eup %1316 }
 0xa82   :  { %v462_v60 = vmul.f32 %v1317_v59, %v460_v58  ;;  %vm467_vm10 = vweird.f32 %v1317_v59 }
 0xa83   :  { %vm468_vm13 = vmor %vm466_vm12, %vm467_vm10 }
 0xa84   :  { %v463_v61 = vsub.f32 1.0, %v462_v60 }
 0xa86   :  { %v464_v63 = vmul.f32 %v1317_v59, %v463_v61 }
 0xa88   :  { %v465_v3 = vadd.f32 %v1317_v59, %v464_v63 }
 0xa8a   :  { %v469_v9 = vsel %vm468_vm13, %v1317_v59, %v465_v3 }
 0xa8b   :  { %v474_v13 = vsel %vm471_vm14, %v473_v6, %v469_v9 }
 0xa8c   :  { %v479_v14 = vmul.f32 %v477_v11, %v474_v13  ;;  %v486_v8 = vsub.f32 1.0, %v474_v13  ;;  %v492_v21 = vmul.f32 %v474_v13, %v1597_v15  ;;  %v1641_v15 = vpop.f32.mrf.mxu0 }
 0xa8e   :  { %481 = vrot.lane.b32.xlu2 %v479_v14, %s1412_s2 }
 0xae8   :  { %v482_v16 = vpop.permute.xlu2 %481 }
 0xae9   :  { %v484_v17 = vadd.f32 %v482_v16, %v451_v53 }
 0xaeb   :  { %1318 = vtanh.f32 %v484_v17 }
 0xaf1   :  { %v1319_v18 = vpop.eup %1318 }
 0xaf2   :  { %488 = vrot.lane.b32.xlu0 %v1319_v18, %s1413_s26 }
 0xb64   :  { %v489_v20 = vpop.permute.xlu0 %488 }
 0xb65   :  { %v491_v22 = vmul.f32 %v489_v20, %v486_v8 }
 0xb67   :  { %v1632_v23 = vadd.f32 %v492_v21, %v491_v22 }
 0xb69   :  { %v498_v24 = vrot.slane %v1632_v23, 4 }
 0xb6b   :  { %v500_v26 = vsel %vm154_vm6, %v495_v25, %v498_v24 }
 0xb6c   :  { %v502_v27 = vrot.slane %v500_v26, 4 }
 0xb6e   :  { %1252 = vmatmul.msk.f32.vlgmr.msrb.gmra.mxu0 %vm88_vm11, %v502_v27 }
 0xb6f   :  { %1071 = vmatpush.msrb.mxu0 %v1468_v0 }
 0xb71   :  { %1072 = vmatpush.msrb.mxu0 %v1473_v1 }
 0xb73   :  { %1073 = vmatpush.msrb.mxu0 %v1486_v4 }
 0xb75   :  { %1074 = vmatpush.msrb.mxu0 %v1493_v5 }
 0xbeb   :  { %v522_v28 = vpop.f32.mrf.mxu0 }
 0xbec   :  { %v523_v29 = vadd.f32 %v1519_v7, %v522_v28 }
 0xbee   :  { %v526_v30 = vrot.slane %v523_v29, 2 }
 0xbf0   :  { %548 = vrot.lane.b32.xlu2 %v526_v30, %s1410_s22  ;;  %v528_v31 = vadd.f32 %v526_v30, %v1531_v12 }
 0xbf2   :  { %v1253_v34 = vmul.f32 -1.442695, %v528_v31 }
 0xbf4   :  { %1320 = vpow2.f32 %v1253_v34  ;;  %v1676_v34 = vadd.f32 %v1528_v10, %v1641_v15 }
 0xbfa   :  { %v1321_v35 = vpop.eup %1320 }
 0xbfb   :  { %v532_v0 = vadd.f32 1.0, %v1321_v35 }
 0xbfd   :  { %1322 = vrcp.f32 %v532_v0  ;;  %v544_v37 = vand.u32 2147483648, %v532_v0  ;;  %v542_v38 = vand.u32 2147483647, %v532_v0  ;;  %vm538_vm15 = vweird.f32 %v532_v0 }
 0xbff   :  { %v545_v41 = vor.u32 1.1754944e-38, %v544_v37  ;;  %vm543_vm2 = vcmp.eq.f32.partialorder %v542_v38, 8.507059e+37 }
 0xc03   :  { %v1323_v1 = vpop.eup %1322 }
 0xc04   :  { %v534_v36 = vmul.f32 %v1323_v1, %v532_v0  ;;  %vm539_vm1 = vweird.f32 %v1323_v1 }
 0xc05   :  { %vm540_vm0 = vmor %vm538_vm15, %vm539_vm1 }
 0xc06   :  { %v535_v4 = vsub.f32 1.0, %v534_v36 }
 0xc08   :  { %v536_v5 = vmul.f32 %v1323_v1, %v535_v4 }
 0xc0a   :  { %v537_v39 = vadd.f32 %v1323_v1, %v536_v5 }
 0xc0c   :  { %v541_v43 = vsel %vm540_vm0, %v1323_v1, %v537_v39 }
 0xc0d   :  { %v546_v45 = vsel %vm543_vm2, %v545_v41, %v541_v43 }
 0xc0e   :  { %v566_v46 = vmul.f32 %v564_v44, %v546_v45  ;;  %v558_v52 = vsub.f32 1.0, %v546_v45 }
 0xc4a   :  { %v549_v47 = vpop.permute.xlu2 %548 }
 0xc4b   :  { %v551_v48 = vmul.f32 %v549_v47, %v546_v45 }
 0xc4d   :  { %553 = vrot.lane.b32.xlu0 %v551_v48, %s1412_s2 }
 0xc55   :  { %594 = vrot.lane.b32.xlu0 %v523_v29, %s1409_s21 }
 0xcbf   :  { %v554_v42 = vpop.permute.xlu0 %553 }
 0xcc0   :  { %v556_v50 = vadd.f32 %v554_v42, %v1531_v12 }
 0xcc2   :  { %1324 = vtanh.f32 %v556_v50 }
 0xcc7   :  { %v595_v58 = vpop.permute.xlu0 %594 }
 0xcc8   :  { %v1325_v51 = vpop.eup %1324 }
 0xcc9   :  { %560 = vrot.lane.b32.xlu1 %v1325_v51, %s1413_s26 }
 0xcd1   :  { %617 = vrot.lane.b32.xlu1 %v523_v29, %s1411_s23 }
 0xd3b   :  { %v561_v53 = vpop.permute.xlu1 %560 }
 0xd3c   :  { %v563_v49 = vmul.f32 %v561_v53, %v558_v52 }
 0xd3e   :  { %v1652_v54 = vadd.f32 %v566_v46, %v563_v49 }
 0xd40   :  { %635 = vrot.lane.b32.xlu1 %v1652_v54, %s1413_s26  ;;  %v569_v55 = vrot.slane %v1652_v54, 6 }
 0xd42   :  { %570 = vrot.lane.b32.xlu2 %v569_v55, %s1413_s26 }
 0xd43   :  { %v618_v14 = vpop.permute.xlu1 %617 }
 0xd9c   :  { %v571_v12 = vpop.permute.xlu2 %570 }
 0xd9d   :  { %1254 = vmatmul.msk.f32.vlgmr.msra.gmra.mxu2 %vm154_vm6, %v571_v12 }
 0xd9e   :  { %1142 = vmatpush.msra.mxu2 %v1540_v32 }
 0xda0   :  { %1143 = vmatpush.msra.mxu2 %v1545_v33 }
 0xdb2   :  { %v636_v27 = vpop.permute.xlu1 %635 }
 0xe20   :  { %v591_v56 = vpop.f32.mrf.mxu2 }
 0xe21   :  { %v592_v57 = vadd.f32 %v1563_v40, %v591_v56 }
 0xe23   :  { %v597_v59 = vadd.f32 %v595_v58, %v592_v57 }
 0xe25   :  { %v1255_v60 = vmul.f32 -1.442695, %v597_v59 }
 0xe27   :  { %1326 = vpow2.f32 %v1255_v60 }
 0xe2d   :  { %v1327_v61 = vpop.eup %1326 }
 0xe2e   :  { %v601_v62 = vadd.f32 1.0, %v1327_v61 }
 0xe30   :  { %1328 = vrcp.f32 %v601_v62  ;;  %v613_v6 = vand.u32 2147483648, %v601_v62  ;;  %v611_v11 = vand.u32 2147483647, %v601_v62  ;;  %vm607_vm4 = vweird.f32 %v601_v62 }
 0xe32   :  { %v614_v33 = vor.u32 1.1754944e-38, %v613_v6  ;;  %vm612_vm7 = vcmp.eq.f32.partialorder %v611_v11, 8.507059e+37 }
 0xe36   :  { %v1329_v63 = vpop.eup %1328 }
 0xe37   :  { %v603_v2 = vmul.f32 %v1329_v63, %v601_v62  ;;  %vm608_vm3 = vweird.f32 %v1329_v63 }
 0xe38   :  { %vm609_vm5 = vmor %vm607_vm4, %vm608_vm3 }
 0xe39   :  { %v604_v3 = vsub.f32 1.0, %v603_v2 }
 0xe3b   :  { %v605_v9 = vmul.f32 %v1329_v63, %v604_v3 }
 0xe3d   :  { %v606_v32 = vadd.f32 %v1329_v63, %v605_v9 }
 0xe3f   :  { %v610_v13 = vsel %vm609_vm5, %v1329_v63, %v606_v32 }
 0xe40   :  { %v615_v16 = vsel %vm612_vm7, %v614_v33, %v610_v13 }
 0xe41   :  { %v620_v17 = vmul.f32 %v618_v14, %v615_v16  ;;  %v627_v20 = vsub.f32 1.0, %v615_v16  ;;  %v633_v22 = vmul.f32 %v615_v16, %v1632_v23 }
 0xe43   :  { %622 = vrot.lane.b32.xlu2 %v620_v17, %s1412_s2 }
 0xe9d   :  { %v623_v18 = vpop.permute.xlu2 %622 }
 0xe9e   :  { %v625_v19 = vadd.f32 %v623_v18, %v592_v57 }
 0xea0   :  { %1330 = vtanh.f32 %v625_v19 }
 0xea6   :  { %v1331_v8 = vpop.eup %1330 }
 0xea7   :  { %629 = vrot.lane.b32.xlu0 %v1331_v8, %s1413_s26 }
 0xf19   :  { %v630_v21 = vpop.permute.xlu0 %629 }
 0xf1a   :  { %v632_v24 = vmul.f32 %v630_v21, %v627_v20 }
 0xf1c   :  { %v1667_v25 = vadd.f32 %v633_v22, %v632_v24 }
 0xf1e   :  { %v639_v26 = vrot.slane %v1667_v25, 2 }
 0xf20   :  { %v641_v28 = vsel %vm154_vm6, %v636_v27, %v639_v26 }
 0xf21   :  { %v643_v29 = vrot.slane %v641_v28, 6 }
 0xf23   :  { %1256 = vmatmul.msk.f32.vlgmr.msra.gmra.mxu1 %vm88_vm11, %v643_v29 }
 0xfa0   :  { %v663_v30 = vpop.f32.mrf.mxu1 }
 0xfa1   :  { %v664_v31 = vadd.f32 %v1519_v7, %v663_v30 }
 0xfa3   :  { %687 = vrot.lane.b32.xlu2 %v664_v31, %s1410_s22  ;;  %v666_v23 = vadd.f32 %v664_v31, %v1676_v34 }
 0xfa5   :  { %v1257_v35 = vmul.f32 -1.442695, %v666_v23 }
 0xfa7   :  { %1332 = vpow2.f32 %v1257_v35 }
 0xfad   :  { %v1333_v0 = vpop.eup %1332 }
 0xfae   :  { %v670_v1 = vadd.f32 1.0, %v1333_v0 }
 0xfb0   :  { %1334 = vrcp.f32 %v670_v1  ;;  %v682_v39 = vand.u32 2147483648, %v670_v1  ;;  %vm676_vm9 = vweird.f32 %v670_v1  ;;  %v680_v41 = vand.u32 2147483647, %v670_v1 }
 0xfb2   :  { %v683_v10 = vor.u32 1.1754944e-38, %v682_v39  ;;  %vm681_vm12 = vcmp.eq.f32.partialorder %v680_v41, 8.507059e+37 }
 0xfb6   :  { %v1335_v36 = vpop.eup %1334 }
 0xfb7   :  { %v672_v4 = vmul.f32 %v1335_v36, %v670_v1  ;;  %vm677_vm8 = vweird.f32 %v1335_v36 }
 0xfb8   :  { %vm678_vm10 = vmor %vm676_vm9, %vm677_vm8 }
 0xfb9   :  { %v673_v37 = vsub.f32 1.0, %v672_v4 }
 0xfbb   :  { %v674_v5 = vmul.f32 %v1335_v36, %v673_v37 }
 0xfbd   :  { %v675_v38 = vadd.f32 %v1335_v36, %v674_v5 }
 0xfbf   :  { %v679_v43 = vsel %vm678_vm10, %v1335_v36, %v675_v38 }
 0xfc0   :  { %v684_v44 = vsel %vm681_vm12, %v683_v10, %v679_v43 }
 0xfc1   :  { %v697_v42 = vsub.f32 1.0, %v684_v44  ;;  %v704_v51 = vmul.f32 %v684_v44, %v569_v55 }
 0xffd   :  { %v688_v15 = vpop.permute.xlu2 %687 }
 0xffe   :  { %v690_v45 = vmul.f32 %v688_v15, %v684_v44 }
0x1000   :  { %692 = vrot.lane.b32.xlu0 %v690_v45, %s1412_s2 }
0x1008   :  { %731 = vrot.lane.b32.xlu0 %v664_v31, %s1409_s21 }
0x1072   :  { %v693_v46 = vpop.permute.xlu0 %692 }
0x1073   :  { %v695_v47 = vadd.f32 %v693_v46, %v1676_v34 }
0x1075   :  { %1336 = vtanh.f32 %v695_v47 }
0x107a   :  { %v732_v57 = vpop.permute.xlu0 %731 }
0x107b   :  { %v1337_v48 = vpop.eup %1336 }
0x107c   :  { %699 = vrot.lane.b32.xlu1 %v1337_v48, %s1413_s26 }
0x1084   :  { %754 = vrot.lane.b32.xlu1 %v664_v31, %s1411_s23 }
0x10ee   :  { %v700_v50 = vpop.permute.xlu1 %699 }
0x10ef   :  { %v702_v52 = vmul.f32 %v700_v50, %v697_v42 }
0x10f1   :  { %v1686_v53 = vadd.f32 %v704_v51, %v702_v52 }
0x10f3   :  { %707 = vrot.lane.b32.xlu2 %v1686_v53, %s1413_s26  ;;  %v836_v15 = vrot.slane %v1686_v53, 6 }
0x10f6   :  { %v755_v32 = vpop.permute.xlu1 %754 }
0x114d   :  { %v708_v49 = vpop.permute.xlu2 %707 }
0x114e   :  { %1258 = vmatmul.msk.f32.vlgmr.msra.gmra.mxu3 %vm154_vm6, %v708_v49 }
0x11d1   :  { %v728_v12 = vpop.f32.mrf.mxu3 }
0x11d2   :  { %v729_v56 = vadd.f32 %v1563_v40, %v728_v12 }
0x11d4   :  { %v734_v58 = vadd.f32 %v732_v57, %v729_v56 }
0x11d6   :  { %v1259_v59 = vmul.f32 -1.442695, %v734_v58 }
0x11d8   :  { %1338 = vpow2.f32 %v1259_v59 }
0x11de   :  { %v1339_v60 = vpop.eup %1338 }
0x11df   :  { %v738_v61 = vadd.f32 1.0, %v1339_v60 }
0x11e1   :  { %1340 = vrcp.f32 %v738_v61  ;;  %v750_v63 = vand.u32 2147483648, %v738_v61  ;;  %v748_v3 = vand.u32 2147483647, %v738_v61  ;;  %vm744_vm14 = vweird.f32 %v738_v61 }
0x11e3   :  { %v751_v9 = vor.u32 1.1754944e-38, %v750_v63  ;;  %vm749_vm15 = vcmp.eq.f32.partialorder %v748_v3, 8.507059e+37 }
0x11e7   :  { %v1341_v54 = vpop.eup %1340 }
0x11e8   :  { %v740_v55 = vmul.f32 %v1341_v54, %v738_v61  ;;  %vm745_vm13 = vweird.f32 %v1341_v54 }
0x11e9   :  { %vm746_vm1 = vmor %vm744_vm14, %vm745_vm13 }
0x11ea   :  { %v741_v62 = vsub.f32 1.0, %v740_v55 }
0x11ec   :  { %v742_v2 = vmul.f32 %v1341_v54, %v741_v62 }
0x11ee   :  { %v743_v6 = vadd.f32 %v1341_v54, %v742_v2 }
0x11f0   :  { %v747_v11 = vsel %vm746_vm1, %v1341_v54, %v743_v6 }
0x11f1   :  { %v752_v33 = vsel %vm749_vm15, %v751_v9, %v747_v11 }
0x11f2   :  { %v757_v13 = vmul.f32 %v755_v32, %v752_v33  ;;  %v764_v18 = vsub.f32 1.0, %v752_v33  ;;  %v770_v8 = vmul.f32 %v752_v33, %v1667_v25 }
0x11f4   :  { %759 = vrot.lane.b32.xlu2 %v757_v13, %s1412_s2 }
0x124e   :  { %v760_v14 = vpop.permute.xlu2 %759 }
0x124f   :  { %v762_v16 = vadd.f32 %v760_v14, %v729_v56 }
0x1251   :  { %1342 = vtanh.f32 %v762_v16 }
0x1257   :  { %v1343_v17 = vpop.eup %1342 }
0x1258   :  { %766 = vrot.lane.b32.xlu0 %v1343_v17, %s1413_s26 }
0x12ca   :  { %v767_v19 = vpop.permute.xlu0 %766 }
0x12cb   :  { %v769_v20 = vmul.f32 %v767_v19, %v764_v18 }
0x12cd   :  { %v1695_v21 = vadd.f32 %v770_v8, %v769_v20 }
0x12cf   :  { %v773_v22 = vsel %vm154_vm6, %v708_v49, %v1695_v21 }
0x12d0   :  { %1260 = vmatmul.msk.f32.vlgmr.msra.gmra.mxu0 %vm88_vm11, %v773_v22 }
0x134d   :  { %v794_v24 = vpop.f32.mrf.mxu0 }
0x134e   :  { %v795_v26 = vadd.f32 %v1519_v7, %v794_v24  ;;  %v1728_v24 = vld [vmem:[%s1793_s4] ss:$0 sm:$0xff] }
0x1350   :  { %v798_v27 = vrot.slane %v795_v26, 6 }
0x1352   :  { %820 = vrot.lane.b32.xlu1 %v798_v27, %s1410_s22  ;;  %v800_v28 = vadd.f32 %v798_v27, %v1676_v34 }
0x1354   :  { %v1261_v29 = vmul.f32 -1.442695, %v800_v28 }
0x1356   :  { %1344 = vpow2.f32 %v1261_v29 }
0x135c   :  { %v1345_v30 = vpop.eup %1344 }
0x135d   :  { %v804_v25 = vadd.f32 1.0, %v1345_v30 }
0x135f   :  { %1346 = vrcp.f32 %v804_v25  ;;  %v816_v36 = vand.u32 2147483648, %v804_v25  ;;  %vm810_vm2 = vweird.f32 %v804_v25  ;;  %v814_v4 = vand.u32 2147483647, %v804_v25 }
0x1361   :  { %v817_v37 = vor.u32 1.1754944e-38, %v816_v36  ;;  %vm815_vm4 = vcmp.eq.f32.partialorder %v814_v4, 8.507059e+37 }
0x1365   :  { %v1347_v31 = vpop.eup %1346 }
0x1366   :  { %v806_v23 = vmul.f32 %v1347_v31, %v804_v25  ;;  %vm811_vm0 = vweird.f32 %v1347_v31 }
0x1367   :  { %vm812_vm3 = vmor %vm810_vm2, %vm811_vm0 }
0x1368   :  { %v807_v35 = vsub.f32 1.0, %v806_v23 }
0x136a   :  { %v808_v0 = vmul.f32 %v1347_v31, %v807_v35 }
0x136c   :  { %v809_v1 = vadd.f32 %v1347_v31, %v808_v0 }
0x136e   :  { %v813_v7 = vsel %vm812_vm3, %v1347_v31, %v809_v1 }
0x136f   :  { %v818_v38 = vsel %vm815_vm4, %v817_v37, %v813_v7 }
0x1370   :  { %v830_v44 = vsub.f32 1.0, %v818_v38  ;;  %v838_v46 = vmul.f32 %v836_v15, %v818_v38 }
0x13c4   :  { %v821_v5 = vpop.permute.xlu1 %820 }
0x13c5   :  { %v823_v39 = vmul.f32 %v821_v5, %v818_v38 }
0x13c7   :  { %825 = vrot.lane.b32.xlu2 %v823_v39, %s1412_s2 }
0x13cf   :  { %866 = vrot.lane.b32.xlu2 %v795_v26, %s1409_s21 }
0x1421   :  { %v826_v41 = vpop.permute.xlu2 %825 }
0x1422   :  { %v828_v43 = vadd.f32 %v826_v41, %v1676_v34 }
0x1424   :  { %1348 = vtanh.f32 %v828_v43 }
0x1429   :  { %v867_v53 = vpop.permute.xlu2 %866 }
0x142a   :  { %v1349_v10 = vpop.eup %1348 }
0x142b   :  { %832 = vrot.lane.b32.xlu0 %v1349_v10, %s1413_s26 }
0x1433   :  { %889 = vrot.lane.b32.xlu0 %v795_v26, %s1411_s23 }
0x149d   :  { %v833_v45 = vpop.permute.xlu0 %832 }
0x149e   :  { %v835_v47 = vmul.f32 %v833_v45, %v830_v44 }
0x14a0   :  { %v1709_v48 = vadd.f32 %v838_v46, %v835_v47 }
0x14a2   :  { %907 = vrot.lane.b32.xlu0 %v1709_v48, %s1413_s26  ;;  %v841_v42 = vrot.slane %v1709_v48, 2  ;;  %v977_v15 = vrot.slane %v1709_v48, 6  ;;  %v1749_v48 = vld [vmem:[%s1795_s6] ss:$0 sm:$0xff] }
0x14a4   :  { %842 = vrot.lane.b32.xlu1 %v841_v42, %s1413_s26 }
0x1516   :  { %v843_v50 = vpop.permute.xlu1 %842 }
0x1517   :  { %1262 = vmatmul.msk.f32.vlgmr.msrb.gmra.mxu2 %vm154_vm6, %v843_v50 }
0x159a   :  { %v863_v51 = vpop.f32.mrf.mxu2 }
0x159b   :  { %v864_v52 = vadd.f32 %v1563_v40, %v863_v51  ;;  %v890_v40 = vpop.permute.xlu0 %889 }
0x159d   :  { %v869_v49 = vadd.f32 %v867_v53, %v864_v52 }
0x159f   :  { %v1263_v12 = vmul.f32 -1.442695, %v869_v49 }
0x15a1   :  { %1350 = vpow2.f32 %v1263_v12 }
0x15a3   :  { %v908_v19 = vpop.permute.xlu0 %907 }
0x15a7   :  { %v1351_v56 = vpop.eup %1350 }
0x15a8   :  { %v873_v57 = vadd.f32 1.0, %v1351_v56 }
0x15aa   :  { %1352 = vrcp.f32 %v873_v57  ;;  %v885_v61 = vand.u32 2147483648, %v873_v57  ;;  %v883_v55 = vand.u32 2147483647, %v873_v57  ;;  %vm879_vm7 = vweird.f32 %v873_v57 }
0x15ac   :  { %v886_v63 = vor.u32 1.1754944e-38, %v885_v61  ;;  %vm884_vm9 = vcmp.eq.f32.partialorder %v883_v55, 8.507059e+37 }
0x15b0   :  { %v1353_v58 = vpop.eup %1352 }
0x15b1   :  { %v875_v59 = vmul.f32 %v1353_v58, %v873_v57  ;;  %vm880_vm5 = vweird.f32 %v1353_v58 }
0x15b2   :  { %vm881_vm8 = vmor %vm879_vm7, %vm880_vm5 }
0x15b3   :  { %v876_v60 = vsub.f32 1.0, %v875_v59 }
0x15b5   :  { %v877_v54 = vmul.f32 %v1353_v58, %v876_v60 }
0x15b7   :  { %v878_v62 = vadd.f32 %v1353_v58, %v877_v54 }
0x15b9   :  { %v882_v2 = vsel %vm881_vm8, %v1353_v58, %v878_v62 }
0x15ba   :  { %v887_v3 = vsel %vm884_vm9, %v886_v63, %v882_v2 }
0x15bb   :  { %v892_v6 = vmul.f32 %v890_v40, %v887_v3  ;;  %v899_v33 = vsub.f32 1.0, %v887_v3  ;;  %v905_v14 = vmul.f32 %v887_v3, %v1695_v21 }
0x15bd   :  { %894 = vrot.lane.b32.xlu1 %v892_v6, %s1412_s2 }
0x162f   :  { %v895_v9 = vpop.permute.xlu1 %894 }
0x1630   :  { %v897_v11 = vadd.f32 %v895_v9, %v864_v52 }
0x1632   :  { %1354 = vtanh.f32 %v897_v11 }
0x1638   :  { %v1355_v32 = vpop.eup %1354 }
0x1639   :  { %901 = vrot.lane.b32.xlu2 %v1355_v32, %s1413_s26 }
0x1693   :  { %v902_v13 = vpop.permute.xlu2 %901 }
0x1694   :  { %v904_v16 = vmul.f32 %v902_v13, %v899_v33 }
0x1696   :  { %v1720_v17 = vadd.f32 %v905_v14, %v904_v16 }
0x1698   :  { %v911_v18 = vrot.slane %v1720_v17, 6 }
0x169a   :  { %v913_v8 = vsel %vm154_vm6, %v908_v19, %v911_v18 }
0x169b   :  { %v915_v20 = vrot.slane %v913_v8, 2 }
0x169d   :  { %1264 = vmatmul.msk.f32.vlgmr.msrb.gmra.mxu1 %vm88_vm11, %v915_v20 }
0x171a   :  { %v935_v22 = vpop.f32.mrf.mxu1 }
0x171b   :  { %v936_v26 = vadd.f32 %v1728_v24, %v935_v22 }
0x171d   :  { %v939_v21 = vrot.slane %v936_v26, 4 }
0x171f   :  { %961 = vrot.lane.b32.xlu1 %v939_v21, %s1410_s22  ;;  %v941_v27 = vadd.f32 %v939_v21, %v1676_v34 }
0x1721   :  { %v1265_v28 = vmul.f32 -1.442695, %v941_v27 }
0x1723   :  { %1356 = vpow2.f32 %v1265_v28 }
0x1729   :  { %v1357_v29 = vpop.eup %1356 }
0x172a   :  { %v945_v30 = vadd.f32 1.0, %v1357_v29 }
0x172c   :  { %1358 = vrcp.f32 %v945_v30  ;;  %v957_v1 = vand.u32 2147483648, %v945_v30  ;;  %vm951_vm12 = vweird.f32 %v945_v30  ;;  %v955_v36 = vand.u32 2147483647, %v945_v30 }
0x172e   :  { %v958_v7 = vor.u32 1.1754944e-38, %v957_v1  ;;  %vm956_vm14 = vcmp.eq.f32.partialorder %v955_v36, 8.507059e+37 }
0x1732   :  { %v1359_v25 = vpop.eup %1358 }
0x1733   :  { %v947_v31 = vmul.f32 %v1359_v25, %v945_v30  ;;  %vm952_vm10 = vweird.f32 %v1359_v25 }
0x1734   :  { %vm953_vm13 = vmor %vm951_vm12, %vm952_vm10  ;;  %vm1220_vm12 = vcmask 33792  }
0x1735   :  { %v948_v23 = vsub.f32 1.0, %v947_v31 }
0x1737   :  { %v949_v35 = vmul.f32 %v1359_v25, %v948_v23 }
0x1739   :  { %v950_v0 = vadd.f32 %v1359_v25, %v949_v35 }
0x173b   :  { %v954_v4 = vsel %vm953_vm13, %v1359_v25, %v950_v0 }
0x173c   :  { %v959_v5 = vsel %vm956_vm14, %v958_v7, %v954_v4 }
0x173d   :  { %v971_v10 = vsub.f32 1.0, %v959_v5  ;;  %v979_v45 = vmul.f32 %v977_v15, %v959_v5 }
0x1791   :  { %v962_v37 = vpop.permute.xlu1 %961 }
0x1792   :  { %v964_v38 = vmul.f32 %v962_v37, %v959_v5 }
0x1794   :  { %966 = vrot.lane.b32.xlu2 %v964_v38, %s1412_s2 }
0x179c   :  { %1007 = vrot.lane.b32.xlu2 %v936_v26, %s1409_s21 }
0x17ee   :  { %v967_v39 = vpop.permute.xlu2 %966 }
0x17ef   :  { %v969_v41 = vadd.f32 %v967_v39, %v1676_v34 }
0x17f1   :  { %1360 = vtanh.f32 %v969_v41 }
0x17f6   :  { %v1008_v53 = vpop.permute.xlu2 %1007 }
0x17f7   :  { %v1361_v43 = vpop.eup %1360 }
0x17f8   :  { %973 = vrot.lane.b32.xlu0 %v1361_v43, %s1413_s26 }
0x1800   :  { %1030 = vrot.lane.b32.xlu0 %v936_v26, %s1411_s23 }
0x186a   :  { %v974_v44 = vpop.permute.xlu0 %973 }
0x186b   :  { %v976_v46 = vmul.f32 %v974_v44, %v971_v10 }
0x186d   :  { %v1739_v47 = vadd.f32 %v979_v45, %v976_v46 }
0x186f   :  { %1048 = vrot.lane.b32.xlu0 %v1739_v47, %s1413_s26  ;;  %v982_v42 = vrot.slane %v1739_v47, 4  ;;  %v1118_v10 = vrot.slane %v1739_v47, 6 }
0x1871   :  { %983 = vrot.lane.b32.xlu1 %v982_v42, %s1413_s26 }
0x1872   :  { %v1031_v40 = vpop.permute.xlu0 %1030 }
0x18e1   :  { %v1049_v8 = vpop.permute.xlu0 %1048 }
0x18e3   :  { %v984_v50 = vpop.permute.xlu1 %983 }
0x18e4   :  { %1266 = vmatmul.msk.f32.vlgmr.msrb.gmra.mxu3 %vm154_vm6, %v984_v50 }
0x1967   :  { %v1004_v51 = vpop.f32.mrf.mxu3 }
0x1968   :  { %v1005_v52 = vadd.f32 %v1749_v48, %v1004_v51 }
0x196a   :  { %v1010_v49 = vadd.f32 %v1008_v53, %v1005_v52 }
0x196c   :  { %v1267_v12 = vmul.f32 -1.442695, %v1010_v49 }
0x196e   :  { %1362 = vpow2.f32 %v1267_v12 }
0x1974   :  { %v1363_v56 = vpop.eup %1362 }
0x1975   :  { %v1014_v57 = vadd.f32 1.0, %v1363_v56 }
0x1977   :  { %1364 = vrcp.f32 %v1014_v57  ;;  %v1026_v61 = vand.u32 2147483648, %v1014_v57  ;;  %v1024_v55 = vand.u32 2147483647, %v1014_v57  ;;  %vm1020_vm15 = vweird.f32 %v1014_v57 }
0x1979   :  { %v1027_v63 = vor.u32 1.1754944e-38, %v1026_v61  ;;  %vm1025_vm2 = vcmp.eq.f32.partialorder %v1024_v55, 8.507059e+37 }
0x197d   :  { %v1365_v58 = vpop.eup %1364 }
0x197e   :  { %v1016_v59 = vmul.f32 %v1365_v58, %v1014_v57  ;;  %vm1021_vm1 = vweird.f32 %v1365_v58 }
0x197f   :  { %vm1022_vm0 = vmor %vm1020_vm15, %vm1021_vm1 }
0x1980   :  { %v1017_v60 = vsub.f32 1.0, %v1016_v59 }
0x1982   :  { %v1018_v54 = vmul.f32 %v1365_v58, %v1017_v60 }
0x1984   :  { %v1019_v62 = vadd.f32 %v1365_v58, %v1018_v54 }
0x1986   :  { %v1023_v2 = vsel %vm1022_vm0, %v1365_v58, %v1019_v62 }
0x1987   :  { %v1028_v3 = vsel %vm1025_vm2, %v1027_v63, %v1023_v2 }
0x1988   :  { %v1033_v6 = vmul.f32 %v1031_v40, %v1028_v3  ;;  %v1040_v33 = vsub.f32 1.0, %v1028_v3  ;;  %v1046_v14 = vmul.f32 %v1028_v3, %v1720_v17 }
0x198a   :  { %1035 = vrot.lane.b32.xlu1 %v1033_v6, %s1412_s2 }
0x19fc   :  { %v1036_v9 = vpop.permute.xlu1 %1035 }
0x19fd   :  { %v1038_v11 = vadd.f32 %v1036_v9, %v1005_v52  ;;  %v1190_v9 = vld [vmem:[%s1796_s7 + $0x8] sm:$0xff] }
0x19fe   :  { %1214 = vmatpush.msra.mxu1 %v1190_v9 }
0x19ff   :  { %1366 = vtanh.f32 %v1038_v11  ;;  %v1189_v11 = vld [vmem:[%s1796_s7] sm:$0xff] }
0x1a00   :  { %1215 = vmatpush.msra.mxu1 %v1189_v11 }
0x1a05   :  { %v1367_v32 = vpop.eup %1366 }
0x1a06   :  { %1042 = vrot.lane.b32.xlu2 %v1367_v32, %s1413_s26 }
0x1a60   :  { %v1043_v13 = vpop.permute.xlu2 %1042 }
0x1a61   :  { %v1045_v16 = vmul.f32 %v1043_v13, %v1040_v33 }
0x1a63   :  { %v1755_v18 = vadd.f32 %v1046_v14, %v1045_v16 }
0x1a65   :  { %v1052_v19 = vrot.slane %v1755_v18, 4 }
0x1a67   :  { %v1054_v20 = vsel %vm154_vm6, %v1049_v8, %v1052_v19  ;;  %v1283_v8 = vld [vmem:[%s1797_s8] ss:$0 sm:$0xff] }
0x1a68   :  { %v1056_v22 = vrot.slane %v1054_v20, 4 }
0x1a6a   :  { %1268 = vmatmul.msk.f32.vlgmr.msrb.gmra.mxu0 %vm88_vm11, %v1056_v22 }
0x1ae7   :  { %v1076_v26 = vpop.f32.mrf.mxu0 }
0x1ae8   :  { %v1077_v21 = vadd.f32 %v1728_v24, %v1076_v26 }
0x1aea   :  { %v1080_v27 = vrot.slane %v1077_v21, 2 }
0x1aec   :  { %1102 = vrot.lane.b32.xlu1 %v1080_v27, %s1410_s22  ;;  %v1082_v28 = vadd.f32 %v1080_v27, %v1676_v34 }
0x1aee   :  { %v1269_v17 = vmul.f32 -1.442695, %v1082_v28 }
0x1af0   :  { %1368 = vpow2.f32 %v1269_v17 }
0x1af6   :  { %v1369_v29 = vpop.eup %1368 }
0x1af7   :  { %v1086_v30 = vadd.f32 1.0, %v1369_v29 }
0x1af9   :  { %1370 = vrcp.f32 %v1086_v30  ;;  %v1098_v1 = vand.u32 2147483648, %v1086_v30  ;;  %vm1092_vm11 = vweird.f32 %v1086_v30  ;;  %v1096_v36 = vand.u32 2147483647, %v1086_v30 }
0x1afb   :  { %v1099_v4 = vor.u32 1.1754944e-38, %v1098_v1  ;;  %vm1097_vm5 = vcmp.eq.f32.partialorder %v1096_v36, 8.507059e+37 }
0x1aff   :  { %v1371_v25 = vpop.eup %1370 }
0x1b00   :  { %v1088_v31 = vmul.f32 %v1371_v25, %v1086_v30  ;;  %vm1093_vm3 = vweird.f32 %v1371_v25 }
0x1b01   :  { %vm1094_vm4 = vmor %vm1092_vm11, %vm1093_vm3 }
0x1b02   :  { %v1089_v23 = vsub.f32 1.0, %v1088_v31 }
0x1b04   :  { %v1090_v35 = vmul.f32 %v1371_v25, %v1089_v23 }
0x1b06   :  { %v1091_v0 = vadd.f32 %v1371_v25, %v1090_v35 }
0x1b08   :  { %v1095_v24 = vsel %vm1094_vm4, %v1371_v25, %v1091_v0 }
0x1b09   :  { %v1100_v37 = vsel %vm1097_vm5, %v1099_v4, %v1095_v24 }
0x1b0a   :  { %v1112_v43 = vsub.f32 1.0, %v1100_v37  ;;  %v1120_v44 = vmul.f32 %v1118_v10, %v1100_v37 }
0x1b5e   :  { %v1103_v7 = vpop.permute.xlu1 %1102 }
0x1b5f   :  { %v1105_v5 = vmul.f32 %v1103_v7, %v1100_v37 }
0x1b61   :  { %1107 = vrot.lane.b32.xlu2 %v1105_v5, %s1412_s2 }
0x1b69   :  { %1148 = vrot.lane.b32.xlu2 %v1077_v21, %s1409_s21  ;;  %s1229_s21 = sshll.u32 %s1798_s9, 4  ;;  %s1230_s21 = int_to_ptr.hbm [resolvable:$true] %s1229_s21 }
0x1bbb   :  { %v1108_v38 = vpop.permute.xlu2 %1107 }
0x1bbc   :  { %v1110_v39 = vadd.f32 %v1108_v38, %v1676_v34 }
0x1bbe   :  { %1372 = vtanh.f32 %v1110_v39 }
0x1bc3   :  { %v1149_v52 = vpop.permute.xlu2 %1148 }
0x1bc4   :  { %v1373_v41 = vpop.eup %1372 }
0x1bc5   :  { %1114 = vrot.lane.b32.xlu0 %v1373_v41, %s1413_s26 }
0x1bcd   :  { %1171 = vrot.lane.b32.xlu0 %v1077_v21, %s1411_s23 }
0x1c37   :  { %v1115_v15 = vpop.permute.xlu0 %1114 }
0x1c38   :  { %v1117_v45 = vmul.f32 %v1115_v15, %v1112_v43 }
0x1c3a   :  { %v1121_v46 = vadd.f32 %v1120_v44, %v1117_v45 }
0x1c3c   :  { %v1123_v42 = vrot.slane %v1121_v46, 6 }
0x1c3e   :  { %1124 = vrot.lane.b32.xlu1 %v1123_v42, %s1413_s26 }
0x1cb0   :  { %v1125_v50 = vpop.permute.xlu1 %1124 }
0x1cb1   :  { %1270 = vmatmul.msk.f32.vlgmr.msra.gmra.mxu2 %vm154_vm6, %v1125_v50 }
0x1d34   :  { %v1145_v34 = vpop.f32.mrf.mxu2 }
0x1d35   :  { %v1146_v51 = vadd.f32 %v1749_v48, %v1145_v34  ;;  %v1172_v48 = vpop.permute.xlu0 %1171 }
0x1d37   :  { %v1151_v53 = vadd.f32 %v1149_v52, %v1146_v51 }
0x1d39   :  { %v1271_v49 = vmul.f32 -1.442695, %v1151_v53 }
0x1d3b   :  { %1374 = vpow2.f32 %v1271_v49 }
0x1d41   :  { %v1375_v12 = vpop.eup %1374 }
0x1d42   :  { %v1155_v56 = vadd.f32 1.0, %v1375_v12 }
0x1d44   :  { %1376 = vrcp.f32 %v1155_v56  ;;  %v1167_v59 = vand.u32 2147483648, %v1155_v56  ;;  %v1165_v61 = vand.u32 2147483647, %v1155_v56  ;;  %vm1161_vm8 = vweird.f32 %v1155_v56 }
0x1d46   :  { %v1168_v55 = vor.u32 1.1754944e-38, %v1167_v59  ;;  %vm1166_vm10 = vcmp.eq.f32.partialorder %v1165_v61, 8.507059e+37 }
0x1d4a   :  { %v1377_v47 = vpop.eup %1376 }
0x1d4b   :  { %v1157_v57 = vmul.f32 %v1377_v47, %v1155_v56  ;;  %vm1162_vm7 = vweird.f32 %v1377_v47 }
0x1d4c   :  { %vm1163_vm9 = vmor %vm1161_vm8, %vm1162_vm7 }
0x1d4d   :  { %v1158_v58 = vsub.f32 1.0, %v1157_v57 }
0x1d4f   :  { %v1159_v60 = vmul.f32 %v1377_v47, %v1158_v58 }
0x1d51   :  { %v1160_v54 = vadd.f32 %v1377_v47, %v1159_v60 }
0x1d53   :  { %v1164_v62 = vsel %vm1163_vm9, %v1377_v47, %v1160_v54 }
0x1d54   :  { %v1169_v63 = vsel %vm1166_vm10, %v1168_v55, %v1164_v62 }
0x1d55   :  { %v1174_v2 = vmul.f32 %v1172_v48, %v1169_v63  ;;  %v1181_v32 = vsub.f32 1.0, %v1169_v63  ;;  %v1187_v13 = vmul.f32 %v1169_v63, %v1755_v18 }
0x1d57   :  { %1176 = vrot.lane.b32.xlu1 %v1174_v2, %s1412_s2 }
0x1dc9   :  { %v1177_v40 = vpop.permute.xlu1 %1176 }
0x1dca   :  { %v1179_v3 = vadd.f32 %v1177_v40, %v1146_v51 }
0x1dcc   :  { %1378 = vtanh.f32 %v1179_v3 }
0x1dd2   :  { %v1379_v6 = vpop.eup %1378 }
0x1dd3   :  { %1183 = vrot.lane.b32.xlu2 %v1379_v6, %s1413_s26 }
0x1e2d   :  { %v1184_v33 = vpop.permute.xlu2 %1183 }
0x1e2e   :  { %v1186_v14 = vmul.f32 %v1184_v33, %v1181_v32 }
0x1e30   :  { %v1188_v16 = vadd.f32 %v1187_v13, %v1186_v14 }
0x1e32   :  { %1196 = vrot.lane.b32.xlu0 %v1188_v16, %s1413_s26 }
0x1ea4   :  { %v1197_v19 = vpop.permute.xlu0 %1196 }
0x1ea5   :  { %1272 = vmatmul.msk.f32.vlgmr.msra.gmra.mxu1 %vm154_vm6, %v1197_v19 }
0x1f22   :  { %v1217_v20 = vpop.f32.mrf.mxu1 }
0x1f23   :  { %v1218_v18 = vadd.f32 %v1283_v8, %v1217_v20 }
0x1f25   :  { %1221 = vst.msk [vmem:[#allocation2] sm:$0x3] %vm1220_vm12, %v1218_v18 }
0x1f26   :  { %1232 = dma.vmem_to_hbm [thread:$0]  %s1228_s1, 32, %s1230_s21, [#allocation3]  }
0x1f27   :  { %1406 = dma.done.wait [#allocation3], 32  }
0x1f28   :  { %1407 = vsyncadd [#allocation3], 4294967264 }
0x1f29   :  { %1237 = vsyncpa [#allocation3], 1 }

</bundles_post_ra>
